<compile_context>
chip_gen: v7x
topology: tpu7x:2x2x1
jax: 0.10.0
libtpu: 0.0.40
codegen_flags: <defaults>
</compile_context>

<pallas_src>
from functools import partial

import jax
import jax.numpy as jnp
from jax.experimental import pallas as pl
from jax.experimental.pallas import tpu as pltpu

_EPS = 1e-5                      # PyTorch BatchNorm2d default eps
_VMEM_LIMIT = 32 * 1024 * 1024   # explicit scoped-VMEM budget (safe on v7x too)


# ---------------------------------------------------------------------------
# Kernels
# ---------------------------------------------------------------------------
def _stats_kernel(x_ref, w1_ref, w2_ref, w3_ref,
                  s1_ref, t1_ref, s2_ref, t2_ref,
                  sum_ref, sq_ref, *, stage):
    """Per-tile partial sum / sum-of-squares of the conv output at `stage`.

    x_ref: (Cin, tile) channels-major tile. Weights are (O, I) matrices.
    stage 0: h = w1 @ x
    stage 1: h = w2 @ relu(bn1(w1 @ x))
    stage 2: h = w3 @ relu(bn2(w2 @ relu(bn1(w1 @ x))))
    """
    x = x_ref[...].astype(jnp.float32)
    h = jnp.dot(w1_ref[...], x, preferred_element_type=jnp.float32)
    if stage >= 1:
        h = jnp.maximum(h * s1_ref[...] + t1_ref[...], 0.0)
        h = jnp.dot(w2_ref[...], h, preferred_element_type=jnp.float32)
    if stage >= 2:
        h = jnp.maximum(h * s2_ref[...] + t2_ref[...], 0.0)
        h = jnp.dot(w3_ref[...], h, preferred_element_type=jnp.float32)
    sum_ref[...] = jnp.sum(h, axis=1, keepdims=True)
    sq_ref[...] = jnp.sum(h * h, axis=1, keepdims=True)


def _apply_kernel(x_ref, w1_ref, w2_ref, w3_ref,
                  s1_ref, t1_ref, s2_ref, t2_ref, s3_ref, t3_ref, o_ref):
    """Apply conv->bn->relu x2, conv->bn, residual add, relu on one tile."""
    x = x_ref[...].astype(jnp.float32)                                # (Cin, tile)
    h = jnp.dot(w1_ref[...], x, preferred_element_type=jnp.float32)   # (C4, tile)
    h = jnp.maximum(h * s1_ref[...] + t1_ref[...], 0.0)
    h = jnp.dot(w2_ref[...], h, preferred_element_type=jnp.float32)   # (C4, tile)
    h = jnp.maximum(h * s2_ref[...] + t2_ref[...], 0.0)
    h = jnp.dot(w3_ref[...], h, preferred_element_type=jnp.float32)   # (Cout, tile)
    h = h * s3_ref[...] + t3_ref[...]
    # Re-read the input tile from VMEM for the residual (short live range).
    o_ref[...] = jnp.maximum(x_ref[...].astype(jnp.float32) + h,
                             0.0).astype(o_ref.dtype)


# ---------------------------------------------------------------------------
# pallas_call builders
# ---------------------------------------------------------------------------
def _const2d_spec(arr):
    # Whole (small) parameter resident in VMEM; block index never changes so
    # it is DMA'd once, not per grid step.
    return pl.BlockSpec(arr.shape, lambda n, t: (0, 0))


def _compiler_params():
    return pltpu.CompilerParams(
        dimension_semantics=("parallel", "parallel"),
        vmem_limit_bytes=_VMEM_LIMIT,
    )


def _stats_call(stage, x3, w1, w2, w3, s1, t1, s2, t2, tile_hw, c_stage):
    N, Cin, HW = x3.shape
    T = HW // tile_hw
    out_sd = jax.ShapeDtypeStruct((N, T, c_stage, 1), jnp.float32)
    sums, sqs = pl.pallas_call(
        partial(_stats_kernel, stage=stage),
        out_shape=(out_sd, out_sd),
        grid=(N, T),
        in_specs=[
            pl.BlockSpec((None, Cin, tile_hw), lambda n, t: (n, 0, t)),
            _const2d_spec(w1), _const2d_spec(w2), _const2d_spec(w3),
            _const2d_spec(s1), _const2d_spec(t1),
            _const2d_spec(s2), _const2d_spec(t2),
        ],
        out_specs=(
            pl.BlockSpec((None, None, c_stage, 1), lambda n, t: (n, t, 0, 0)),
            pl.BlockSpec((None, None, c_stage, 1), lambda n, t: (n, t, 0, 0)),
        ),
        compiler_params=_compiler_params(),
    )(x3, w1, w2, w3, s1, t1, s2, t2)
    return sums, sqs


def _apply_call(x3, w1, w2, w3, s1, t1, s2, t2, s3, t3, tile_hw):
    N, Cin, HW = x3.shape
    Cout = w3.shape[0]
    T = HW // tile_hw
    return pl.pallas_call(
        _apply_kernel,
        out_shape=jax.ShapeDtypeStruct((N, Cout, HW), x3.dtype),
        grid=(N, T),
        in_specs=[pl.BlockSpec((None, Cin, tile_hw), lambda n, t: (n, 0, t))]
        + [_const2d_spec(a) for a in (w1, w2, w3, s1, t1, s2, t2, s3, t3)],
        out_specs=pl.BlockSpec((None, Cout, tile_hw), lambda n, t: (n, 0, t)),
        compiler_params=_compiler_params(),
    )(x3, w1, w2, w3, s1, t1, s2, t2, s3, t3)


def _bn_fold(sum_p, sq_p, gamma, beta, count):
    """Fold global single-pass stats + affine into per-channel scale/shift."""
    s = jnp.sum(sum_p, axis=(0, 1))               # (C, 1)
    ss = jnp.sum(sq_p, axis=(0, 1))               # (C, 1)
    mean = s / count
    var = ss / count - mean * mean                # biased var, single pass
    inv = jax.lax.rsqrt(var + _EPS)
    scale = gamma.reshape(-1, 1) * inv
    shift = beta.reshape(-1, 1) - mean * scale
    return scale, shift


def _pick_tile_hw(hw, cin, cout, itemsize,
                  budget_bytes=8 * 1024 * 1024, max_tile=512):
    """Largest lane-dense (multiple of 128) tile dividing hw within budget.

    Budget covers the double-buffered input and output tiles. 512 lanes is
    already in the measured ~85%-of-roofline regime; raise max_tile for
    v5e/v6e's larger VMEM if desired.
    """
    if hw % 128 != 0:
        return hw  # block == full dim is always allowed
    best = 128
    t = 128
    while t <= min(hw, max_tile):
        if hw % t == 0 and 2 * (cin + cout) * t * itemsize <= budget_bytes:
            best = t
        t += 128
    return best


# ---------------------------------------------------------------------------
# Public forward pass
# ---------------------------------------------------------------------------
def res_bottleneck(x_nchw, params, *, tile_hw=None):
    """Forward pass of ResBottleneck (training-mode BN). x_nchw: (N,Cin,H,W)."""
    N, Cin, H, W = x_nchw.shape
    w1, w2, w3 = params["w1"], params["w2"], params["w3"]   # (O, I) matrices
    c4, Cout = w1.shape[0], w3.shape[0]
    assert Cin == Cout, "residual add requires Cin == Cout"
    HW = H * W
    if tile_hw is None:
        tile_hw = _pick_tile_hw(HW, Cin, Cout, jnp.dtype(x_nchw.dtype).itemsize)
    assert HW % tile_hw == 0

    # Channels-major view: pure reshape, no transpose, no extra HBM pass.
    x3 = x_nchw.reshape(N, Cin, HW)
    count = N * HW
    zero4 = jnp.zeros((c4, 1), jnp.float32)

    # Sweep 1: stats of conv1(x) -> bn1 scale/shift.
    p1s, p1q = _stats_call(0, x3, w1, w2, w3, zero4, zero4, zero4, zero4,
                           tile_hw, c4)
    s1, t1 = _bn_fold(p1s, p1q, params["g1"], params["b1"], count)
    # Sweep 2: stats of conv2(relu(bn1(conv1 x))) -> bn2 scale/shift.
    p2s, p2q = _stats_call(1, x3, w1, w2, w3, s1, t1, zero4, zero4,
                           tile_hw, c4)
    s2, t2 = _bn_fold(p2s, p2q, params["g2"], params["b2"], count)
    # Sweep 3: stats of conv3(...) -> bn3 scale/shift.
    p3s, p3q = _stats_call(2, x3, w1, w2, w3, s1, t1, s2, t2,
                           tile_hw, Cout)
    s3, t3 = _bn_fold(p3s, p3q, params["g3"], params["b3"], count)
    # Sweep 4: apply full chain + residual + relu, write output tiles.
    out3 = _apply_call(x3, w1, w2, w3, s1, t1, s2, t2, s3, t3, tile_hw)
    return out3.reshape(N, Cout, H, W)


# ---------------------------------------------------------------------------
# Params + pure-JAX reference
# ---------------------------------------------------------------------------
def init_params(key, input_channels, output_channels):
    assert input_channels == output_channels, "residual add requires Cin == Cout"
    c4 = output_channels // 4
    ks = jax.random.split(key, 9)
    # Conv weights in PyTorch OIHW layout (1x1 kernels, bias=False).
    cw1 = jax.random.normal(ks[0], (c4, input_channels, 1, 1), jnp.float32) * 0.1
    cw2 = jax.random.normal(ks[1], (c4, c4, 1, 1), jnp.float32) * 0.1
    cw3 = jax.random.normal(ks[2], (output_channels, c4, 1, 1), jnp.float32) * 0.1
    g1 = 1.0 + 0.1 * jax.random.normal(ks[3], (c4,), jnp.float32)
    b1 = 0.1 * jax.random.normal(ks[4], (c4,), jnp.float32)
    g2 = 1.0 + 0.1 * jax.random.normal(ks[5], (c4,), jnp.float32)
    b2 = 0.1 * jax.random.normal(ks[6], (c4,), jnp.float32)
    g3 = 1.0 + 0.1 * jax.random.normal(ks[7], (output_channels,), jnp.float32)
    b3 = 0.1 * jax.random.normal(ks[8], (output_channels,), jnp.float32)
    return {
        # (O, I) matmul form: y = W @ x in channels-major layout (no transpose).
        "w1": cw1.reshape(c4, input_channels),
        "w2": cw2.reshape(c4, c4),
        "w3": cw3.reshape(output_channels, c4),
        # Original OIHW conv weights, kept for the pure-JAX reference.
        "cw1": cw1, "cw2": cw2, "cw3": cw3,
        "g1": g1, "b1": b1, "g2": g2, "b2": b2, "g3": g3, "b3": b3,
    }


def reference(x, p):
    """Pure-JAX NCHW reference (conv + training-mode BN), for validation."""
    def conv1x1(h, w):
        return jax.lax.conv_general_dilated(
            h, w, window_strides=(1, 1), padding="VALID",
            dimension_numbers=("NCHW", "OIHW", "NCHW"))

    def bn(h, g, b):
        mean = jnp.mean(h, axis=(0, 2, 3), keepdims=True)
        var = jnp.mean((h - mean) ** 2, axis=(0, 2, 3), keepdims=True)
        gr = g.reshape(1, -1, 1, 1)
        br = b.reshape(1, -1, 1, 1)
        return (h - mean) * jax.lax.rsqrt(var + _EPS) * gr + br

    h = jax.nn.relu(bn(conv1x1(x, p["cw1"]), p["g1"], p["b1"]))
    h = jax.nn.relu(bn(conv1x1(h, p["cw2"]), p["g2"], p["b2"]))
    h = bn(conv1x1(h, p["cw3"]), p["g3"], p["b3"])
    return jax.nn.relu(x + h)


if __name__ == "__main__":
    key = jax.random.PRNGKey(0)
    k_x, k_p = jax.random.split(key)

    # Small but multi-tile: N=2, C=32 (c4=8), H=W=32 -> HW=1024, tile_hw=512,
    # grid=(2, 2): exercises cross-batch and cross-HW-tile BN statistics.
    N, C, Hs, Ws = 2, 32, 32, 32
    x = jax.random.normal(k_x, (N, C, Hs, Ws), jnp.float32)
    params = init_params(k_p, input_channels=C, output_channels=C)

    fwd = jax.jit(res_bottleneck, static_argnames=("tile_hw",))
    out = jax.block_until_ready(fwd(x, params))

    ref = jax.block_until_ready(reference(x, params))
    assert out.shape == ref.shape == (N, C, Hs, Ws)
    max_err = float(jnp.max(jnp.abs(out - ref)))
    assert jnp.allclose(out, ref, atol=1e-3, rtol=1e-3), max_err

    print("KERNEL_OK")
</pallas_src>

<mosaic_0001>
module attributes {stable_mosaic.version = 11 : i64} {
  func.func @_stats_kernel(%arg0: i32, %arg1: i32, %arg2: memref<1x32x512xf32, #tpu.memory_space<vmem>>, %arg3: memref<8x32xf32, #tpu.memory_space<vmem>>, %arg4: memref<8x8xf32, #tpu.memory_space<vmem>>, %arg5: memref<32x8xf32, #tpu.memory_space<vmem>>, %arg6: memref<8x1xf32, #tpu.memory_space<vmem>>, %arg7: memref<8x1xf32, #tpu.memory_space<vmem>>, %arg8: memref<8x1xf32, #tpu.memory_space<vmem>>, %arg9: memref<8x1xf32, #tpu.memory_space<vmem>>, %arg10: memref<1x1x8x1xf32, #tpu.memory_space<vmem>>, %arg11: memref<1x1x8x1xf32, #tpu.memory_space<vmem>>) attributes {dimension_semantics = [#tpu.dimension_semantics<parallel>, #tpu.dimension_semantics<parallel>], iteration_bounds = array<i64: 2, 2>, scalar_prefetch = 0 : i64, scratch_operands = 0 : i64, tpu.core_type = #tpu.core_type<tc>, window_params = [{transform_indices = @transform_0, window_bounds = array<i64: 1, 32, 512>}, {pipeline_mode = #tpu.pipeline_mode<synchronous>, transform_indices = @transform_1, window_bounds = array<i64: 8, 32>}, {pipeline_mode = #tpu.pipeline_mode<synchronous>, transform_indices = @transform_2, window_bounds = array<i64: 8, 8>}, {pipeline_mode = #tpu.pipeline_mode<synchronous>, transform_indices = @transform_3, window_bounds = array<i64: 32, 8>}, {pipeline_mode = #tpu.pipeline_mode<synchronous>, transform_indices = @transform_4, window_bounds = array<i64: 8, 1>}, {pipeline_mode = #tpu.pipeline_mode<synchronous>, transform_indices = @transform_5, window_bounds = array<i64: 8, 1>}, {pipeline_mode = #tpu.pipeline_mode<synchronous>, transform_indices = @transform_6, window_bounds = array<i64: 8, 1>}, {pipeline_mode = #tpu.pipeline_mode<synchronous>, transform_indices = @transform_7, window_bounds = array<i64: 8, 1>}, {transform_indices = @transform_8, window_bounds = array<i64: 1, 1, 8, 1>}, {transform_indices = @transform_9, window_bounds = array<i64: 1, 1, 8, 1>}]} {
    %c0 = arith.constant 0 : index
    %c0_0 = arith.constant 0 : index
    %c0_1 = arith.constant 0 : index
    %0 = vector.load %arg2[%c0, %c0_0, %c0_1] : memref<1x32x512xf32, #tpu.memory_space<vmem>>, vector<1x32x512xf32>
    %1 = vector.shape_cast %0 : vector<1x32x512xf32> to vector<32x512xf32>
    %c0_2 = arith.constant 0 : index
    %c0_3 = arith.constant 0 : index
    %2 = vector.load %arg3[%c0_2, %c0_3] : memref<8x32xf32, #tpu.memory_space<vmem>>, vector<8x32xf32>
    %cst = arith.constant dense<0.000000e+00> : vector<8x512xf32>
    %3 = tpu.matmul %2, %1, %cst {dimension_numbers = #tpu.dot_dimension_numbers<[1], [0], [0], [1], [0, 0, 1, 1], [], []>} : vector<8x32xf32>, vector<32x512xf32>, vector<8x512xf32> -> vector<8x512xf32>
    %cst_4 = arith.constant dense<0.000000e+00> : vector<8xf32>
    %4 = vector.multi_reduction <add>, %3, %cst_4 [1] : vector<8x512xf32> to vector<8xf32>
    %5 = vector.shape_cast %4 : vector<8xf32> to vector<8x1xf32>
    %c0_5 = arith.constant 0 : index
    %c0_6 = arith.constant 0 : index
    %c0_7 = arith.constant 0 : index
    %c0_8 = arith.constant 0 : index
    %6 = vector.load %arg10[%c0_5, %c0_6, %c0_7, %c0_8] : memref<1x1x8x1xf32, #tpu.memory_space<vmem>>, vector<1x1x8x1xf32>
    %7 = vector.shape_cast %6 : vector<1x1x8x1xf32> to vector<8x1xf32>
    %8 = vector.shape_cast %5 : vector<8x1xf32> to vector<1x1x8x1xf32>
    tpu.vector_store %arg10[%c0_5, %c0_6, %c0_7, %c0_8], %8 {strides = array<i32>} : memref<1x1x8x1xf32, #tpu.memory_space<vmem>>, vector<1x1x8x1xf32>,
    %9 = arith.mulf %3, %3 : vector<8x512xf32>
    %cst_9 = arith.constant dense<0.000000e+00> : vector<8xf32>
    %10 = vector.multi_reduction <add>, %9, %cst_9 [1] : vector<8x512xf32> to vector<8xf32>
    %11 = vector.shape_cast %10 : vector<8xf32> to vector<8x1xf32>
    %c0_10 = arith.constant 0 : index
    %c0_11 = arith.constant 0 : index
    %c0_12 = arith.constant 0 : index
    %c0_13 = arith.constant 0 : index
    %12 = vector.load %arg11[%c0_10, %c0_11, %c0_12, %c0_13] : memref<1x1x8x1xf32, #tpu.memory_space<vmem>>, vector<1x1x8x1xf32>
    %13 = vector.shape_cast %12 : vector<1x1x8x1xf32> to vector<8x1xf32>
    %14 = vector.shape_cast %11 : vector<8x1xf32> to vector<1x1x8x1xf32>
    tpu.vector_store %arg11[%c0_10, %c0_11, %c0_12, %c0_13], %14 {strides = array<i32>} : memref<1x1x8x1xf32, #tpu.memory_space<vmem>>, vector<1x1x8x1xf32>,
    return
  }
  func.func @transform_0(%arg0: i32, %arg1: i32) -> (i32, i32, i32) {
    %c0_i32 = arith.constant 0 : i32
    %c0_i32_0 = arith.constant 0 : i32
    return %arg0, %c0_i32, %arg1 : i32, i32, i32
  }
  func.func @transform_1(%arg0: i32, %arg1: i32) -> (i32, i32) {
    %c0_i32 = arith.constant 0 : i32
    %c0_i32_0 = arith.constant 0 : i32
    %c0_i32_1 = arith.constant 0 : i32
    return %c0_i32, %c0_i32_0 : i32, i32
  }
  func.func @transform_2(%arg0: i32, %arg1: i32) -> (i32, i32) {
    %c0_i32 = arith.constant 0 : i32
    %c0_i32_0 = arith.constant 0 : i32
    %c0_i32_1 = arith.constant 0 : i32
    return %c0_i32, %c0_i32_0 : i32, i32
  }
  func.func @transform_3(%arg0: i32, %arg1: i32) -> (i32, i32) {
    %c0_i32 = arith.constant 0 : i32
    %c0_i32_0 = arith.constant 0 : i32
    %c0_i32_1 = arith.constant 0 : i32
    return %c0_i32, %c0_i32_0 : i32, i32
  }
  func.func @transform_4(%arg0: i32, %arg1: i32) -> (i32, i32) {
    %c0_i32 = arith.constant 0 : i32
    %c0_i32_0 = arith.constant 0 : i32
    %c0_i32_1 = arith.constant 0 : i32
    return %c0_i32, %c0_i32_0 : i32, i32
  }
  func.func @transform_5(%arg0: i32, %arg1: i32) -> (i32, i32) {
    %c0_i32 = arith.constant 0 : i32
    %c0_i32_0 = arith.constant 0 : i32
    %c0_i32_1 = arith.constant 0 : i32
    return %c0_i32, %c0_i32_0 : i32, i32
  }
  func.func @transform_6(%arg0: i32, %arg1: i32) -> (i32, i32) {
    %c0_i32 = arith.constant 0 : i32
    %c0_i32_0 = arith.constant 0 : i32
    %c0_i32_1 = arith.constant 0 : i32
    return %c0_i32, %c0_i32_0 : i32, i32
  }
  func.func @transform_7(%arg0: i32, %arg1: i32) -> (i32, i32) {
    %c0_i32 = arith.constant 0 : i32
    %c0_i32_0 = arith.constant 0 : i32
    %c0_i32_1 = arith.constant 0 : i32
    return %c0_i32, %c0_i32_0 : i32, i32
  }
  func.func @transform_8(%arg0: i32, %arg1: i32) -> (i32, i32, i32, i32) {
    %c0_i32 = arith.constant 0 : i32
    %c0_i32_0 = arith.constant 0 : i32
    %c0_i32_1 = arith.constant 0 : i32
    return %arg0, %arg1, %c0_i32, %c0_i32_0 : i32, i32, i32, i32
  }
  func.func @transform_9(%arg0: i32, %arg1: i32) -> (i32, i32, i32, i32) {
    %c0_i32 = arith.constant 0 : i32
    %c0_i32_0 = arith.constant 0 : i32
    %c0_i32_1 = arith.constant 0 : i32
    return %arg0, %arg1, %c0_i32, %c0_i32_0 : i32, i32, i32, i32
  }
}

module attributes {stable_mosaic.version = 11 : i64} {
  func.func @_stats_kernel(%arg0: i32, %arg1: i32, %arg2: memref<1x32x512xf32, #tpu.memory_space<vmem>>, %arg3: memref<8x32xf32, #tpu.memory_space<vmem>>, %arg4: memref<8x8xf32, #tpu.memory_space<vmem>>, %arg5: memref<32x8xf32, #tpu.memory_space<vmem>>, %arg6: memref<8x1xf32, #tpu.memory_space<vmem>>, %arg7: memref<8x1xf32, #tpu.memory_space<vmem>>, %arg8: memref<8x1xf32, #tpu.memory_space<vmem>>, %arg9: memref<8x1xf32, #tpu.memory_space<vmem>>, %arg10: memref<1x1x8x1xf32, #tpu.memory_space<vmem>>, %arg11: memref<1x1x8x1xf32, #tpu.memory_space<vmem>>) attributes {dimension_semantics = [#tpu.dimension_semantics<parallel>, #tpu.dimension_semantics<parallel>], iteration_bounds = array<i64: 2, 2>, scalar_prefetch = 0 : i64, scratch_operands = 0 : i64, tpu.core_type = #tpu.core_type<tc>, window_params = [{transform_indices = @transform_0, window_bounds = array<i64: 1, 32, 512>}, {pipeline_mode = #tpu.pipeline_mode<synchronous>, transform_indices = @transform_1, window_bounds = array<i64: 8, 32>}, {pipeline_mode = #tpu.pipeline_mode<synchronous>, transform_indices = @transform_2, window_bounds = array<i64: 8, 8>}, {pipeline_mode = #tpu.pipeline_mode<synchronous>, transform_indices = @transform_3, window_bounds = array<i64: 32, 8>}, {pipeline_mode = #tpu.pipeline_mode<synchronous>, transform_indices = @transform_4, window_bounds = array<i64: 8, 1>}, {pipeline_mode = #tpu.pipeline_mode<synchronous>, transform_indices = @transform_5, window_bounds = array<i64: 8, 1>}, {pipeline_mode = #tpu.pipeline_mode<synchronous>, transform_indices = @transform_6, window_bounds = array<i64: 8, 1>}, {pipeline_mode = #tpu.pipeline_mode<synchronous>, transform_indices = @transform_7, window_bounds = array<i64: 8, 1>}, {transform_indices = @transform_8, window_bounds = array<i64: 1, 1, 8, 1>}, {transform_indices = @transform_9, window_bounds = array<i64: 1, 1, 8, 1>}]} {
    %c0 = arith.constant 0 : index
    %c0_0 = arith.constant 0 : index
    %c0_1 = arith.constant 0 : index
    %0 = vector.load %arg2[%c0, %c0_0, %c0_1] : memref<1x32x512xf32, #tpu.memory_space<vmem>>, vector<1x32x512xf32>
    %1 = vector.shape_cast %0 : vector<1x32x512xf32> to vector<32x512xf32>
    %c0_2 = arith.constant 0 : index
    %c0_3 = arith.constant 0 : index
    %2 = vector.load %arg3[%c0_2, %c0_3] : memref<8x32xf32, #tpu.memory_space<vmem>>, vector<8x32xf32>
    %cst = arith.constant dense<0.000000e+00> : vector<8x512xf32>
    %3 = tpu.matmul %2, %1, %cst {dimension_numbers = #tpu.dot_dimension_numbers<[1], [0], [0], [1], [0, 0, 1, 1], [], []>} : vector<8x32xf32>, vector<32x512xf32>, vector<8x512xf32> -> vector<8x512xf32>
    %c0_4 = arith.constant 0 : index
    %c0_5 = arith.constant 0 : index
    %4 = vector.load %arg6[%c0_4, %c0_5] : memref<8x1xf32, #tpu.memory_space<vmem>>, vector<8x1xf32>
    %5 = vector.broadcast %4 : vector<8x1xf32> to vector<8x512xf32>
    %6 = arith.mulf %3, %5 : vector<8x512xf32>
    %c0_6 = arith.constant 0 : index
    %c0_7 = arith.constant 0 : index
    %7 = vector.load %arg7[%c0_6, %c0_7] : memref<8x1xf32, #tpu.memory_space<vmem>>, vector<8x1xf32>
    %8 = vector.broadcast %7 : vector<8x1xf32> to vector<8x512xf32>
    %9 = arith.addf %6, %8 : vector<8x512xf32>
    %cst_8 = arith.constant 0.000000e+00 : f32
    %10 = vector.broadcast %cst_8 : f32 to vector<8x512xf32>
    %11 = arith.maximumf %9, %10 : vector<8x512xf32>
    %c0_9 = arith.constant 0 : index
    %c0_10 = arith.constant 0 : index
    %12 = vector.load %arg4[%c0_9, %c0_10] : memref<8x8xf32, #tpu.memory_space<vmem>>, vector<8x8xf32>
    %cst_11 = arith.constant dense<0.000000e+00> : vector<8x512xf32>
    %13 = tpu.matmul %12, %11, %cst_11 {dimension_numbers = #tpu.dot_dimension_numbers<[1], [0], [0], [1], [0, 0, 1, 1], [], []>} : vector<8x8xf32>, vector<8x512xf32>, vector<8x512xf32> -> vector<8x512xf32>
    %cst_12 = arith.constant dense<0.000000e+00> : vector<8xf32>
    %14 = vector.multi_reduction <add>, %13, %cst_12 [1] : vector<8x512xf32> to vector<8xf32>
    %15 = vector.shape_cast %14 : vector<8xf32> to vector<8x1xf32>
    %c0_13 = arith.constant 0 : index
    %c0_14 = arith.constant 0 : index
    %c0_15 = arith.constant 0 : index
    %c0_16 = arith.constant 0 : index
    %16 = vector.load %arg10[%c0_13, %c0_14, %c0_15, %c0_16] : memref<1x1x8x1xf32, #tpu.memory_space<vmem>>, vector<1x1x8x1xf32>
    %17 = vector.shape_cast %16 : vector<1x1x8x1xf32> to vector<8x1xf32>
    %18 = vector.shape_cast %15 : vector<8x1xf32> to vector<1x1x8x1xf32>
    tpu.vector_store %arg10[%c0_13, %c0_14, %c0_15, %c0_16], %18 {strides = array<i32>} : memref<1x1x8x1xf32, #tpu.memory_space<vmem>>, vector<1x1x8x1xf32>,
    %19 = arith.mulf %13, %13 : vector<8x512xf32>
    %cst_17 = arith.constant dense<0.000000e+00> : vector<8xf32>
    %20 = vector.multi_reduction <add>, %19, %cst_17 [1] : vector<8x512xf32> to vector<8xf32>
    %21 = vector.shape_cast %20 : vector<8xf32> to vector<8x1xf32>
    %c0_18 = arith.constant 0 : index
    %c0_19 = arith.constant 0 : index
    %c0_20 = arith.constant 0 : index
    %c0_21 = arith.constant 0 : index
    %22 = vector.load %arg11[%c0_18, %c0_19, %c0_20, %c0_21] : memref<1x1x8x1xf32, #tpu.memory_space<vmem>>, vector<1x1x8x1xf32>
    %23 = vector.shape_cast %22 : vector<1x1x8x1xf32> to vector<8x1xf32>
    %24 = vector.shape_cast %21 : vector<8x1xf32> to vector<1x1x8x1xf32>
    tpu.vector_store %arg11[%c0_18, %c0_19, %c0_20, %c0_21], %24 {strides = array<i32>} : memref<1x1x8x1xf32, #tpu.memory_space<vmem>>, vector<1x1x8x1xf32>,
    return
  }
  func.func @transform_0(%arg0: i32, %arg1: i32) -> (i32, i32, i32) {
    %c0_i32 = arith.constant 0 : i32
    %c0_i32_0 = arith.constant 0 : i32
    return %arg0, %c0_i32, %arg1 : i32, i32, i32
  }
  func.func @transform_1(%arg0: i32, %arg1: i32) -> (i32, i32) {
    %c0_i32 = arith.constant 0 : i32
    %c0_i32_0 = arith.constant 0 : i32
    %c0_i32_1 = arith.constant 0 : i32
    return %c0_i32, %c0_i32_0 : i32, i32
  }
  func.func @transform_2(%arg0: i32, %arg1: i32) -> (i32, i32) {
    %c0_i32 = arith.constant 0 : i32
    %c0_i32_0 = arith.constant 0 : i32
    %c0_i32_1 = arith.constant 0 : i32
    return %c0_i32, %c0_i32_0 : i32, i32
  }
  func.func @transform_3(%arg0: i32, %arg1: i32) -> (i32, i32) {
    %c0_i32 = arith.constant 0 : i32
    %c0_i32_0 = arith.constant 0 : i32
    %c0_i32_1 = arith.constant 0 : i32
    return %c0_i32, %c0_i32_0 : i32, i32
  }
  func.func @transform_4(%arg0: i32, %arg1: i32) -> (i32, i32) {
    %c0_i32 = arith.constant 0 : i32
    %c0_i32_0 = arith.constant 0 : i32
    %c0_i32_1 = arith.constant 0 : i32
    return %c0_i32, %c0_i32_0 : i32, i32
  }
  func.func @transform_5(%arg0: i32, %arg1: i32) -> (i32, i32) {
    %c0_i32 = arith.constant 0 : i32
    %c0_i32_0 = arith.constant 0 : i32
    %c0_i32_1 = arith.constant 0 : i32
    return %c0_i32, %c0_i32_0 : i32, i32
  }
  func.func @transform_6(%arg0: i32, %arg1: i32) -> (i32, i32) {
    %c0_i32 = arith.constant 0 : i32
    %c0_i32_0 = arith.constant 0 : i32
    %c0_i32_1 = arith.constant 0 : i32
    return %c0_i32, %c0_i32_0 : i32, i32
  }
  func.func @transform_7(%arg0: i32, %arg1: i32) -> (i32, i32) {
    %c0_i32 = arith.constant 0 : i32
    %c0_i32_0 = arith.constant 0 : i32
    %c0_i32_1 = arith.constant 0 : i32
    return %c0_i32, %c0_i32_0 : i32, i32
  }
  func.func @transform_8(%arg0: i32, %arg1: i32) -> (i32, i32, i32, i32) {
    %c0_i32 = arith.constant 0 : i32
    %c0_i32_0 = arith.constant 0 : i32
    %c0_i32_1 = arith.constant 0 : i32
    return %arg0, %arg1, %c0_i32, %c0_i32_0 : i32, i32, i32, i32
  }
  func.func @transform_9(%arg0: i32, %arg1: i32) -> (i32, i32, i32, i32) {
    %c0_i32 = arith.constant 0 : i32
    %c0_i32_0 = arith.constant 0 : i32
    %c0_i32_1 = arith.constant 0 : i32
    return %arg0, %arg1, %c0_i32, %c0_i32_0 : i32, i32, i32, i32
  }
}

module attributes {stable_mosaic.version = 11 : i64} {
  func.func @_stats_kernel(%arg0: i32, %arg1: i32, %arg2: memref<1x32x512xf32, #tpu.memory_space<vmem>>, %arg3: memref<8x32xf32, #tpu.memory_space<vmem>>, %arg4: memref<8x8xf32, #tpu.memory_space<vmem>>, %arg5: memref<32x8xf32, #tpu.memory_space<vmem>>, %arg6: memref<8x1xf32, #tpu.memory_space<vmem>>, %arg7: memref<8x1xf32, #tpu.memory_space<vmem>>, %arg8: memref<8x1xf32, #tpu.memory_space<vmem>>, %arg9: memref<8x1xf32, #tpu.memory_space<vmem>>, %arg10: memref<1x1x32x1xf32, #tpu.memory_space<vmem>>, %arg11: memref<1x1x32x1xf32, #tpu.memory_space<vmem>>) attributes {dimension_semantics = [#tpu.dimension_semantics<parallel>, #tpu.dimension_semantics<parallel>], iteration_bounds = array<i64: 2, 2>, scalar_prefetch = 0 : i64, scratch_operands = 0 : i64, tpu.core_type = #tpu.core_type<tc>, window_params = [{transform_indices = @transform_0, window_bounds = array<i64: 1, 32, 512>}, {pipeline_mode = #tpu.pipeline_mode<synchronous>, transform_indices = @transform_1, window_bounds = array<i64: 8, 32>}, {pipeline_mode = #tpu.pipeline_mode<synchronous>, transform_indices = @transform_2, window_bounds = array<i64: 8, 8>}, {pipeline_mode = #tpu.pipeline_mode<synchronous>, transform_indices = @transform_3, window_bounds = array<i64: 32, 8>}, {pipeline_mode = #tpu.pipeline_mode<synchronous>, transform_indices = @transform_4, window_bounds = array<i64: 8, 1>}, {pipeline_mode = #tpu.pipeline_mode<synchronous>, transform_indices = @transform_5, window_bounds = array<i64: 8, 1>}, {pipeline_mode = #tpu.pipeline_mode<synchronous>, transform_indices = @transform_6, window_bounds = array<i64: 8, 1>}, {pipeline_mode = #tpu.pipeline_mode<synchronous>, transform_indices = @transform_7, window_bounds = array<i64: 8, 1>}, {transform_indices = @transform_8, window_bounds = array<i64: 1, 1, 32, 1>}, {transform_indices = @transform_9, window_bounds = array<i64: 1, 1, 32, 1>}]} {
    %c0 = arith.constant 0 : index
    %c0_0 = arith.constant 0 : index
    %c0_1 = arith.constant 0 : index
    %0 = vector.load %arg2[%c0, %c0_0, %c0_1] : memref<1x32x512xf32, #tpu.memory_space<vmem>>, vector<1x32x512xf32>
    %1 = vector.shape_cast %0 : vector<1x32x512xf32> to vector<32x512xf32>
    %c0_2 = arith.constant 0 : index
    %c0_3 = arith.constant 0 : index
    %2 = vector.load %arg3[%c0_2, %c0_3] : memref<8x32xf32, #tpu.memory_space<vmem>>, vector<8x32xf32>
    %cst = arith.constant dense<0.000000e+00> : vector<8x512xf32>
    %3 = tpu.matmul %2, %1, %cst {dimension_numbers = #tpu.dot_dimension_numbers<[1], [0], [0], [1], [0, 0, 1, 1], [], []>} : vector<8x32xf32>, vector<32x512xf32>, vector<8x512xf32> -> vector<8x512xf32>
    %c0_4 = arith.constant 0 : index
    %c0_5 = arith.constant 0 : index
    %4 = vector.load %arg6[%c0_4, %c0_5] : memref<8x1xf32, #tpu.memory_space<vmem>>, vector<8x1xf32>
    %5 = vector.broadcast %4 : vector<8x1xf32> to vector<8x512xf32>
    %6 = arith.mulf %3, %5 : vector<8x512xf32>
    %c0_6 = arith.constant 0 : index
    %c0_7 = arith.constant 0 : index
    %7 = vector.load %arg7[%c0_6, %c0_7] : memref<8x1xf32, #tpu.memory_space<vmem>>, vector<8x1xf32>
    %8 = vector.broadcast %7 : vector<8x1xf32> to vector<8x512xf32>
    %9 = arith.addf %6, %8 : vector<8x512xf32>
    %cst_8 = arith.constant 0.000000e+00 : f32
    %10 = vector.broadcast %cst_8 : f32 to vector<8x512xf32>
    %11 = arith.maximumf %9, %10 : vector<8x512xf32>
    %c0_9 = arith.constant 0 : index
    %c0_10 = arith.constant 0 : index
    %12 = vector.load %arg4[%c0_9, %c0_10] : memref<8x8xf32, #tpu.memory_space<vmem>>, vector<8x8xf32>
    %cst_11 = arith.constant dense<0.000000e+00> : vector<8x512xf32>
    %13 = tpu.matmul %12, %11, %cst_11 {dimension_numbers = #tpu.dot_dimension_numbers<[1], [0], [0], [1], [0, 0, 1, 1], [], []>} : vector<8x8xf32>, vector<8x512xf32>, vector<8x512xf32> -> vector<8x512xf32>
    %c0_12 = arith.constant 0 : index
    %c0_13 = arith.constant 0 : index
    %14 = vector.load %arg8[%c0_12, %c0_13] : memref<8x1xf32, #tpu.memory_space<vmem>>, vector<8x1xf32>
    %15 = vector.broadcast %14 : vector<8x1xf32> to vector<8x512xf32>
    %16 = arith.mulf %13, %15 : vector<8x512xf32>
    %c0_14 = arith.constant 0 : index
    %c0_15 = arith.constant 0 : index
    %17 = vector.load %arg9[%c0_14, %c0_15] : memref<8x1xf32, #tpu.memory_space<vmem>>, vector<8x1xf32>
    %18 = vector.broadcast %17 : vector<8x1xf32> to vector<8x512xf32>
    %19 = arith.addf %16, %18 : vector<8x512xf32>
    %cst_16 = arith.constant 0.000000e+00 : f32
    %20 = vector.broadcast %cst_16 : f32 to vector<8x512xf32>
    %21 = arith.maximumf %19, %20 : vector<8x512xf32>
    %c0_17 = arith.constant 0 : index
    %c0_18 = arith.constant 0 : index
    %22 = vector.load %arg5[%c0_17, %c0_18] : memref<32x8xf32, #tpu.memory_space<vmem>>, vector<32x8xf32>
    %cst_19 = arith.constant dense<0.000000e+00> : vector<32x512xf32>
    %23 = tpu.matmul %22, %21, %cst_19 {dimension_numbers = #tpu.dot_dimension_numbers<[1], [0], [0], [1], [0, 0, 1, 1], [], []>} : vector<32x8xf32>, vector<8x512xf32>, vector<32x512xf32> -> vector<32x512xf32>
    %cst_20 = arith.constant dense<0.000000e+00> : vector<32xf32>
    %24 = vector.multi_reduction <add>, %23, %cst_20 [1] : vector<32x512xf32> to vector<32xf32>
    %25 = vector.shape_cast %24 : vector<32xf32> to vector<32x1xf32>
    %c0_21 = arith.constant 0 : index
    %c0_22 = arith.constant 0 : index
    %c0_23 = arith.constant 0 : index
    %c0_24 = arith.constant 0 : index
    %26 = vector.load %arg10[%c0_21, %c0_22, %c0_23, %c0_24] : memref<1x1x32x1xf32, #tpu.memory_space<vmem>>, vector<1x1x32x1xf32>
    %27 = vector.shape_cast %26 : vector<1x1x32x1xf32> to vector<32x1xf32>
    %28 = vector.shape_cast %25 : vector<32x1xf32> to vector<1x1x32x1xf32>
    tpu.vector_store %arg10[%c0_21, %c0_22, %c0_23, %c0_24], %28 {strides = array<i32>} : memref<1x1x32x1xf32, #tpu.memory_space<vmem>>, vector<1x1x32x1xf32>,
    %29 = arith.mulf %23, %23 : vector<32x512xf32>
    %cst_25 = arith.constant dense<0.000000e+00> : vector<32xf32>
    %30 = vector.multi_reduction <add>, %29, %cst_25 [1] : vector<32x512xf32> to vector<32xf32>
    %31 = vector.shape_cast %30 : vector<32xf32> to vector<32x1xf32>
    %c0_26 = arith.constant 0 : index
    %c0_27 = arith.constant 0 : index
    %c0_28 = arith.constant 0 : index
    %c0_29 = arith.constant 0 : index
    %32 = vector.load %arg11[%c0_26, %c0_27, %c0_28, %c0_29] : memref<1x1x32x1xf32, #tpu.memory_space<vmem>>, vector<1x1x32x1xf32>
    %33 = vector.shape_cast %32 : vector<1x1x32x1xf32> to vector<32x1xf32>
    %34 = vector.shape_cast %31 : vector<32x1xf32> to vector<1x1x32x1xf32>
    tpu.vector_store %arg11[%c0_26, %c0_27, %c0_28, %c0_29], %34 {strides = array<i32>} : memref<1x1x32x1xf32, #tpu.memory_space<vmem>>, vector<1x1x32x1xf32>,
    return
  }
  func.func @transform_0(%arg0: i32, %arg1: i32) -> (i32, i32, i32) {
    %c0_i32 = arith.constant 0 : i32
    %c0_i32_0 = arith.constant 0 : i32
    return %arg0, %c0_i32, %arg1 : i32, i32, i32
  }
  func.func @transform_1(%arg0: i32, %arg1: i32) -> (i32, i32) {
    %c0_i32 = arith.constant 0 : i32
    %c0_i32_0 = arith.constant 0 : i32
    %c0_i32_1 = arith.constant 0 : i32
    return %c0_i32, %c0_i32_0 : i32, i32
  }
  func.func @transform_2(%arg0: i32, %arg1: i32) -> (i32, i32) {
    %c0_i32 = arith.constant 0 : i32
    %c0_i32_0 = arith.constant 0 : i32
    %c0_i32_1 = arith.constant 0 : i32
    return %c0_i32, %c0_i32_0 : i32, i32
  }
  func.func @transform_3(%arg0: i32, %arg1: i32) -> (i32, i32) {
    %c0_i32 = arith.constant 0 : i32
    %c0_i32_0 = arith.constant 0 : i32
    %c0_i32_1 = arith.constant 0 : i32
    return %c0_i32, %c0_i32_0 : i32, i32
  }
  func.func @transform_4(%arg0: i32, %arg1: i32) -> (i32, i32) {
    %c0_i32 = arith.constant 0 : i32
    %c0_i32_0 = arith.constant 0 : i32
    %c0_i32_1 = arith.constant 0 : i32
    return %c0_i32, %c0_i32_0 : i32, i32
  }
  func.func @transform_5(%arg0: i32, %arg1: i32) -> (i32, i32) {
    %c0_i32 = arith.constant 0 : i32
    %c0_i32_0 = arith.constant 0 : i32
    %c0_i32_1 = arith.constant 0 : i32
    return %c0_i32, %c0_i32_0 : i32, i32
  }
  func.func @transform_6(%arg0: i32, %arg1: i32) -> (i32, i32) {
    %c0_i32 = arith.constant 0 : i32
    %c0_i32_0 = arith.constant 0 : i32
    %c0_i32_1 = arith.constant 0 : i32
    return %c0_i32, %c0_i32_0 : i32, i32
  }
  func.func @transform_7(%arg0: i32, %arg1: i32) -> (i32, i32) {
    %c0_i32 = arith.constant 0 : i32
    %c0_i32_0 = arith.constant 0 : i32
    %c0_i32_1 = arith.constant 0 : i32
    return %c0_i32, %c0_i32_0 : i32, i32
  }
  func.func @transform_8(%arg0: i32, %arg1: i32) -> (i32, i32, i32, i32) {
    %c0_i32 = arith.constant 0 : i32
    %c0_i32_0 = arith.constant 0 : i32
    %c0_i32_1 = arith.constant 0 : i32
    return %arg0, %arg1, %c0_i32, %c0_i32_0 : i32, i32, i32, i32
  }
  func.func @transform_9(%arg0: i32, %arg1: i32) -> (i32, i32, i32, i32) {
    %c0_i32 = arith.constant 0 : i32
    %c0_i32_0 = arith.constant 0 : i32
    %c0_i32_1 = arith.constant 0 : i32
    return %arg0, %arg1, %c0_i32, %c0_i32_0 : i32, i32, i32, i32
  }
}

module attributes {stable_mosaic.version = 11 : i64} {
  func.func @_apply_kernel(%arg0: i32, %arg1: i32, %arg2: memref<1x32x512xf32, #tpu.memory_space<vmem>>, %arg3: memref<8x32xf32, #tpu.memory_space<vmem>>, %arg4: memref<8x8xf32, #tpu.memory_space<vmem>>, %arg5: memref<32x8xf32, #tpu.memory_space<vmem>>, %arg6: memref<8x1xf32, #tpu.memory_space<vmem>>, %arg7: memref<8x1xf32, #tpu.memory_space<vmem>>, %arg8: memref<8x1xf32, #tpu.memory_space<vmem>>, %arg9: memref<8x1xf32, #tpu.memory_space<vmem>>, %arg10: memref<32x1xf32, #tpu.memory_space<vmem>>, %arg11: memref<32x1xf32, #tpu.memory_space<vmem>>, %arg12: memref<1x32x512xf32, #tpu.memory_space<vmem>>) attributes {dimension_semantics = [#tpu.dimension_semantics<parallel>, #tpu.dimension_semantics<parallel>], iteration_bounds = array<i64: 2, 2>, scalar_prefetch = 0 : i64, scratch_operands = 0 : i64, tpu.core_type = #tpu.core_type<tc>, window_params = [{transform_indices = @transform_0, window_bounds = array<i64: 1, 32, 512>}, {pipeline_mode = #tpu.pipeline_mode<synchronous>, transform_indices = @transform_1, window_bounds = array<i64: 8, 32>}, {pipeline_mode = #tpu.pipeline_mode<synchronous>, transform_indices = @transform_2, window_bounds = array<i64: 8, 8>}, {pipeline_mode = #tpu.pipeline_mode<synchronous>, transform_indices = @transform_3, window_bounds = array<i64: 32, 8>}, {pipeline_mode = #tpu.pipeline_mode<synchronous>, transform_indices = @transform_4, window_bounds = array<i64: 8, 1>}, {pipeline_mode = #tpu.pipeline_mode<synchronous>, transform_indices = @transform_5, window_bounds = array<i64: 8, 1>}, {pipeline_mode = #tpu.pipeline_mode<synchronous>, transform_indices = @transform_6, window_bounds = array<i64: 8, 1>}, {pipeline_mode = #tpu.pipeline_mode<synchronous>, transform_indices = @transform_7, window_bounds = array<i64: 8, 1>}, {pipeline_mode = #tpu.pipeline_mode<synchronous>, transform_indices = @transform_8, window_bounds = array<i64: 32, 1>}, {pipeline_mode = #tpu.pipeline_mode<synchronous>, transform_indices = @transform_9, window_bounds = array<i64: 32, 1>}, {transform_indices = @transform_10, window_bounds = array<i64: 1, 32, 512>}]} {
    %c0 = arith.constant 0 : index
    %c0_0 = arith.constant 0 : index
    %c0_1 = arith.constant 0 : index
    %0 = vector.load %arg2[%c0, %c0_0, %c0_1] : memref<1x32x512xf32, #tpu.memory_space<vmem>>, vector<1x32x512xf32>
    %1 = vector.shape_cast %0 : vector<1x32x512xf32> to vector<32x512xf32>
    %c0_2 = arith.constant 0 : index
    %c0_3 = arith.constant 0 : index
    %2 = vector.load %arg3[%c0_2, %c0_3] : memref<8x32xf32, #tpu.memory_space<vmem>>, vector<8x32xf32>
    %cst = arith.constant dense<0.000000e+00> : vector<8x512xf32>
    %3 = tpu.matmul %2, %1, %cst {dimension_numbers = #tpu.dot_dimension_numbers<[1], [0], [0], [1], [0, 0, 1, 1], [], []>} : vector<8x32xf32>, vector<32x512xf32>, vector<8x512xf32> -> vector<8x512xf32>
    %c0_4 = arith.constant 0 : index
    %c0_5 = arith.constant 0 : index
    %4 = vector.load %arg6[%c0_4, %c0_5] : memref<8x1xf32, #tpu.memory_space<vmem>>, vector<8x1xf32>
    %5 = vector.broadcast %4 : vector<8x1xf32> to vector<8x512xf32>
    %6 = arith.mulf %3, %5 : vector<8x512xf32>
    %c0_6 = arith.constant 0 : index
    %c0_7 = arith.constant 0 : index
    %7 = vector.load %arg7[%c0_6, %c0_7] : memref<8x1xf32, #tpu.memory_space<vmem>>, vector<8x1xf32>
    %8 = vector.broadcast %7 : vector<8x1xf32> to vector<8x512xf32>
    %9 = arith.addf %6, %8 : vector<8x512xf32>
    %cst_8 = arith.constant 0.000000e+00 : f32
    %10 = vector.broadcast %cst_8 : f32 to vector<8x512xf32>
    %11 = arith.maximumf %9, %10 : vector<8x512xf32>
    %c0_9 = arith.constant 0 : index
    %c0_10 = arith.constant 0 : index
    %12 = vector.load %arg4[%c0_9, %c0_10] : memref<8x8xf32, #tpu.memory_space<vmem>>, vector<8x8xf32>
    %cst_11 = arith.constant dense<0.000000e+00> : vector<8x512xf32>
    %13 = tpu.matmul %12, %11, %cst_11 {dimension_numbers = #tpu.dot_dimension_numbers<[1], [0], [0], [1], [0, 0, 1, 1], [], []>} : vector<8x8xf32>, vector<8x512xf32>, vector<8x512xf32> -> vector<8x512xf32>
    %c0_12 = arith.constant 0 : index
    %c0_13 = arith.constant 0 : index
    %14 = vector.load %arg8[%c0_12, %c0_13] : memref<8x1xf32, #tpu.memory_space<vmem>>, vector<8x1xf32>
    %15 = vector.broadcast %14 : vector<8x1xf32> to vector<8x512xf32>
    %16 = arith.mulf %13, %15 : vector<8x512xf32>
    %c0_14 = arith.constant 0 : index
    %c0_15 = arith.constant 0 : index
    %17 = vector.load %arg9[%c0_14, %c0_15] : memref<8x1xf32, #tpu.memory_space<vmem>>, vector<8x1xf32>
    %18 = vector.broadcast %17 : vector<8x1xf32> to vector<8x512xf32>
    %19 = arith.addf %16, %18 : vector<8x512xf32>
    %cst_16 = arith.constant 0.000000e+00 : f32
    %20 = vector.broadcast %cst_16 : f32 to vector<8x512xf32>
    %21 = arith.maximumf %19, %20 : vector<8x512xf32>
    %c0_17 = arith.constant 0 : index
    %c0_18 = arith.constant 0 : index
    %22 = vector.load %arg5[%c0_17, %c0_18] : memref<32x8xf32, #tpu.memory_space<vmem>>, vector<32x8xf32>
    %cst_19 = arith.constant dense<0.000000e+00> : vector<32x512xf32>
    %23 = tpu.matmul %22, %21, %cst_19 {dimension_numbers = #tpu.dot_dimension_numbers<[1], [0], [0], [1], [0, 0, 1, 1], [], []>} : vector<32x8xf32>, vector<8x512xf32>, vector<32x512xf32> -> vector<32x512xf32>
    %c0_20 = arith.constant 0 : index
    %c0_21 = arith.constant 0 : index
    %24 = vector.load %arg10[%c0_20, %c0_21] : memref<32x1xf32, #tpu.memory_space<vmem>>, vector<32x1xf32>
    %25 = vector.broadcast %24 : vector<32x1xf32> to vector<32x512xf32>
    %26 = arith.mulf %23, %25 : vector<32x512xf32>
    %c0_22 = arith.constant 0 : index
    %c0_23 = arith.constant 0 : index
    %27 = vector.load %arg11[%c0_22, %c0_23] : memref<32x1xf32, #tpu.memory_space<vmem>>, vector<32x1xf32>
    %28 = vector.broadcast %27 : vector<32x1xf32> to vector<32x512xf32>
    %29 = arith.addf %26, %28 : vector<32x512xf32>
    %c0_24 = arith.constant 0 : index
    %c0_25 = arith.constant 0 : index
    %c0_26 = arith.constant 0 : index
    %30 = vector.load %arg2[%c0_24, %c0_25, %c0_26] : memref<1x32x512xf32, #tpu.memory_space<vmem>>, vector<1x32x512xf32>
    %31 = vector.shape_cast %30 : vector<1x32x512xf32> to vector<32x512xf32>
    %32 = arith.addf %31, %29 : vector<32x512xf32>
    %cst_27 = arith.constant 0.000000e+00 : f32
    %33 = vector.broadcast %cst_27 : f32 to vector<32x512xf32>
    %34 = arith.maximumf %32, %33 : vector<32x512xf32>
    %c0_28 = arith.constant 0 : index
    %c0_29 = arith.constant 0 : index
    %c0_30 = arith.constant 0 : index
    %35 = vector.load %arg12[%c0_28, %c0_29, %c0_30] : memref<1x32x512xf32, #tpu.memory_space<vmem>>, vector<1x32x512xf32>
    %36 = vector.shape_cast %35 : vector<1x32x512xf32> to vector<32x512xf32>
    %37 = vector.shape_cast %34 : vector<32x512xf32> to vector<1x32x512xf32>
    tpu.vector_store %arg12[%c0_28, %c0_29, %c0_30], %37 {strides = array<i32>} : memref<1x32x512xf32, #tpu.memory_space<vmem>>, vector<1x32x512xf32>,
    return
  }
  func.func @transform_0(%arg0: i32, %arg1: i32) -> (i32, i32, i32) {
    %c0_i32 = arith.constant 0 : i32
    %c0_i32_0 = arith.constant 0 : i32
    return %arg0, %c0_i32, %arg1 : i32, i32, i32
  }
  func.func @transform_1(%arg0: i32, %arg1: i32) -> (i32, i32) {
    %c0_i32 = arith.constant 0 : i32
    %c0_i32_0 = arith.constant 0 : i32
    %c0_i32_1 = arith.constant 0 : i32
    return %c0_i32, %c0_i32_0 : i32, i32
  }
  func.func @transform_2(%arg0: i32, %arg1: i32) -> (i32, i32) {
    %c0_i32 = arith.constant 0 : i32
    %c0_i32_0 = arith.constant 0 : i32
    %c0_i32_1 = arith.constant 0 : i32
    return %c0_i32, %c0_i32_0 : i32, i32
  }
  func.func @transform_3(%arg0: i32, %arg1: i32) -> (i32, i32) {
    %c0_i32 = arith.constant 0 : i32
    %c0_i32_0 = arith.constant 0 : i32
    %c0_i32_1 = arith.constant 0 : i32
    return %c0_i32, %c0_i32_0 : i32, i32
  }
  func.func @transform_4(%arg0: i32, %arg1: i32) -> (i32, i32) {
    %c0_i32 = arith.constant 0 : i32
    %c0_i32_0 = arith.constant 0 : i32
    %c0_i32_1 = arith.constant 0 : i32
    return %c0_i32, %c0_i32_0 : i32, i32
  }
  func.func @transform_5(%arg0: i32, %arg1: i32) -> (i32, i32) {
    %c0_i32 = arith.constant 0 : i32
    %c0_i32_0 = arith.constant 0 : i32
    %c0_i32_1 = arith.constant 0 : i32
    return %c0_i32, %c0_i32_0 : i32, i32
  }
  func.func @transform_6(%arg0: i32, %arg1: i32) -> (i32, i32) {
    %c0_i32 = arith.constant 0 : i32
    %c0_i32_0 = arith.constant 0 : i32
    %c0_i32_1 = arith.constant 0 : i32
    return %c0_i32, %c0_i32_0 : i32, i32
  }
  func.func @transform_7(%arg0: i32, %arg1: i32) -> (i32, i32) {
    %c0_i32 = arith.constant 0 : i32
    %c0_i32_0 = arith.constant 0 : i32
    %c0_i32_1 = arith.constant 0 : i32
    return %c0_i32, %c0_i32_0 : i32, i32
  }
  func.func @transform_8(%arg0: i32, %arg1: i32) -> (i32, i32) {
    %c0_i32 = arith.constant 0 : i32
    %c0_i32_0 = arith.constant 0 : i32
    %c0_i32_1 = arith.constant 0 : i32
    return %c0_i32, %c0_i32_0 : i32, i32
  }
  func.func @transform_9(%arg0: i32, %arg1: i32) -> (i32, i32) {
    %c0_i32 = arith.constant 0 : i32
    %c0_i32_0 = arith.constant 0 : i32
    %c0_i32_1 = arith.constant 0 : i32
    return %c0_i32, %c0_i32_0 : i32, i32
  }
  func.func @transform_10(%arg0: i32, %arg1: i32) -> (i32, i32, i32) {
    %c0_i32 = arith.constant 0 : i32
    %c0_i32_0 = arith.constant 0 : i32
    return %arg0, %c0_i32, %arg1 : i32, i32, i32
  }
}

</mosaic_0001>

<bundles_post_ra>
// kernel: res_bottleneck.4
= control target key start
LH: loop header
LB: loop body
LE: loop exit
PB: predicated region body
PF: predicated region fallthrough
CT: control target
= control target key end

     0   :  { %s943_s29 = smov 0   ;;  %s945_s3 = smov 0   ;;  %s1058_s0 = inlined_call_operand.vmem [shape: f32[2,32,1024], index: 0, kind: input, shape index: {}]   ;;  %s1059_s1 = inlined_call_operand.vmem [shape: f32[8,32], index: 1, kind: input, shape index: {}]   ;;  %s1060_s2 = inlined_call_operand.vmem [shape: f32[8,8], index: 2, kind: input, shape index: {}]   ;;  %s1061_s3 = inlined_call_operand.vmem [shape: f32[32,8], index: 3, kind: input, shape index: {}]   ;;  %s1062_s4 = inlined_call_operand.vmem [shape: f32[8,1], index: 4, kind: input, shape index: {}, may-alias: {4,5,6,7}]   ;;  %s1063_s5 = inlined_call_operand.vmem [shape: f32[8,1], index: 5, kind: input, shape index: {}, may-alias: {4,5,6,7}]   ;;  %s1064_s6 = inlined_call_operand.vmem [shape: f32[8,1], index: 6, kind: input, shape index: {}, may-alias: {4,5,6,7}]   ;;  %s1065_s7 = inlined_call_operand.vmem [shape: f32[8,1], index: 7, kind: input, shape index: {}, may-alias: {4,5,6,7}]   ;;  %s1066_s8 = inlined_call_operand.vmem [shape: f32[2,2,8,1], index: 8, kind: output, shape index: {0}]   ;;  %s1067_s9 = inlined_call_operand.vmem [shape: f32[2,2,8,1], index: 9, kind: output, shape index: {1}]  }
   0x1   :  { %s947_s4 = smov 0   ;;  %s949_s30 = smov 0  }
   0x2   :  { %s951_s5 = smov 0   ;;  %s953_s6 = smov 0  }
   0x3   :  { %s955_s10 = smov 0  }
   0x4 LB: > { %s29_s7 = sadd.s32 1, %s882_s5  ;;  %s32_s11 = sadd.s32 1, %s886_s6  ;;  %s890_s10 = sphi %s955_s10, %s20_s10   ;;  %s886_s6 = sphi %s953_s6, %s1073_s6   ;;  %s882_s5 = sphi %s951_s5, %s1072_s5   ;;  %s878_s30 = sphi %s949_s30, %s1071_s30   ;;  %s874_s4 = sphi %s947_s4, %s1070_s4   ;;  %s870_s3 = sphi %s945_s3, %s1069_s3   ;;  %s866_s29 = sphi %s943_s29, %s1068_s29  }
   0x5   : > { %p30_p0 = scmp.ge.s32.totalorder %s29_s7, 2  ;;  %p48_p1 = scmp.ne.s32.totalorder %s870_s3, %s866_s29 }
   0x6   : > { %p49_p2 = scmp.eq.s32.totalorder %s890_s10, 0  ;;  %s41_s15 = sadd.s32 1, %s870_s3 }
   0x7   : > { %s1075_s7 = smov (%p30_p0, %s29_s7), 0  ;;  %s1077_s11 = smov (!%p30_p0, %s32_s11), %s886_s6 }
   0x8   : > { %p50_p3 = por %p49_p2, %p48_p1  ;;  %p34_p4 = scmp.ge.s32.totalorder %s1077_s11, 2 }
   0x9   : > { %s37_s12 = ssub.s32 %s882_s5, %s1075_s7  ;;  %p748_p6 = scmp.ge.s32.totalorder %s890_s10, 4 }
   0xa   : > { %s1079_s11 = smov (%p34_p4, %s1077_s11), 0 }
   0xb   : > { %s36_s13 = ssub.s32 %s886_s6, %s1079_s11  ;;  %298 = sbr.rel (%p748_p6) target bundleno = 33 (0x21), region = 44 }
   0xc   : > { %s38_s14 = sor.u32 %s37_s12, %s36_s13 }
   0xd   : > { %p39_p5 = scmp.eq.s32.totalorder %s38_s14, 0 }
   0xf   : > { %s994_s16 = scalar_select %p39_p5, %s870_s3, %s41_s15  }
  0x12   : > { %301 = sbr.rel (!%p50_p3) target bundleno = 33 (0x21), region = 48  ;;  %s303_s17 = sand.u32 (%p50_p3), 1, %s870_s3  }
  0x13   : > { %s750_s18 = sshll.u32 (%p50_p3), %s882_s5, 2  ;;  %s749_s19 = sshll.u32 (%p50_p3), %s303_s17, 7 }
  0x14   : > { %s751_s20 = sshll.u32 (%p50_p3), %s886_s6, 5  ;;  %s305_s26 = scalar_lea.vmem (%p50_p3), [#allocation2], %s749_s19 }
  0x15   : > { %s308_s21 = sadd.s32 (%p50_p3), %s751_s20, %s750_s18 }
  0x16   : > { %s752_s22 = sshll.u32 (%p50_p3), %s308_s21, 3 }
  0x17   : > { %s1003_s25 = scalar_lea.vmem (%p50_p3), %s1058_s0, %s752_s22 }
  0x18   : > { %v323_v0 = vld [vmem:[%s1003_s25] sm:$0xff] (%p50_p3)  ;;  %v325_v1 = vld [vmem:[%s1003_s25 + $0x8] sm:$0xff] (%p50_p3)  ;;  %v327_v2 = vld [vmem:[%s1003_s25 + $0x10] sm:$0xff] (%p50_p3) }
  0x19   : > { %324 = vst [vmem:[%s305_s26] sm:$0xff] %v323_v0  ;;  %326 = vst [vmem:[%s305_s26 + $0x8] sm:$0xff] %v325_v1  ;;  %v329_v3 = vld [vmem:[%s1003_s25 + $0x18] sm:$0xff]  ;;  %v331_v4 = vld [vmem:[%s1003_s25 + $0x40] sm:$0xff] }
  0x1a   : > { %328 = vst [vmem:[%s305_s26 + $0x10] sm:$0xff] %v327_v2  ;;  %v333_v5 = vld [vmem:[%s1003_s25 + $0x48] sm:$0xff]  ;;  %330 = vst [vmem:[%s305_s26 + $0x18] sm:$0xff] %v329_v3  ;;  %v335_v6 = vld [vmem:[%s1003_s25 + $0x50] sm:$0xff] }
  0x1b   : > { %332 = vst [vmem:[%s305_s26 + $0x20] sm:$0xff] %v331_v4  ;;  %334 = vst [vmem:[%s305_s26 + $0x28] sm:$0xff] %v333_v5  ;;  %v337_v7 = vld [vmem:[%s1003_s25 + $0x58] sm:$0xff]  ;;  %v339_v8 = vld [vmem:[%s1003_s25 + $0x80] sm:$0xff] }
  0x1c   : > { %336 = vst [vmem:[%s305_s26 + $0x30] sm:$0xff] %v335_v6  ;;  %338 = vst [vmem:[%s305_s26 + $0x38] sm:$0xff] %v337_v7  ;;  %v341_v9 = vld [vmem:[%s1003_s25 + $0x88] sm:$0xff]  ;;  %v343_v10 = vld [vmem:[%s1003_s25 + $0x90] sm:$0xff] }
  0x1d   : > { %340 = vst [vmem:[%s305_s26 + $0x40] sm:$0xff] %v339_v8  ;;  %v345_v11 = vld [vmem:[%s1003_s25 + $0x98] sm:$0xff]  ;;  %342 = vst [vmem:[%s305_s26 + $0x48] sm:$0xff] %v341_v9  ;;  %v347_v12 = vld [vmem:[%s1003_s25 + $0xc0] sm:$0xff] }
  0x1e   : > { %344 = vst [vmem:[%s305_s26 + $0x50] sm:$0xff] %v343_v10  ;;  %346 = vst [vmem:[%s305_s26 + $0x58] sm:$0xff] %v345_v11  ;;  %v349_v13 = vld [vmem:[%s1003_s25 + $0xc8] sm:$0xff]  ;;  %v351_v14 = vld [vmem:[%s1003_s25 + $0xd0] sm:$0xff] }
  0x1f   : > { %348 = vst [vmem:[%s305_s26 + $0x60] sm:$0xff] %v347_v12  ;;  %350 = vst [vmem:[%s305_s26 + $0x68] sm:$0xff] %v349_v13  ;;  %v353_v15 = vld [vmem:[%s1003_s25 + $0xd8] sm:$0xff] }
  0x20   : > { %352 = vst [vmem:[%s305_s26 + $0x70] sm:$0xff] %v351_v14  ;;  %354 = vst [vmem:[%s305_s26 + $0x78] sm:$0xff] %v353_v15 }
  0x21 PF: > { %p753_p7 = scmp.ge.s32.totalorder %s890_s10, 1  ;;  %p359_p8 = scmp.lt.s32.totalorder %s890_s10, 5 }
  0x23   : > { %p360_p9 = pnand %p753_p7, %p359_p8 }
  0x24   : > { %s366_s27 = sand.u32 (!%p360_p9), 1, %s866_s29   ;;  %v892_v16 = vmov (!%p360_p9), 0.0   ;;  %v445_v41 = vld [vmem:[%s1059_s1] sm:$0xff] (!%p360_p9)  ;;  %vm446_vm0 = vcmask (!%p360_p9), 261120   ;;  %p413_p10 = scmp.lt.s32.totalorder (!%p360_p9), %s878_s30, 1  ;;  %vm597_vm1 = vcmask (!%p360_p9), 7168  }
  0x25   : > { %363 = sbr.rel (%p360_p9) target bundleno = 417 (0x1a1), region = 71  ;;  %s754_s28 = sshll.u32 (!%p360_p9), %s366_s27, 7  ;;  %514 = vmatprep.mubr.f32.mxu0 (!%p360_p9), %v892_v16  ;;  %585 = vmatprep.mubr.f32.mxu1 (!%p360_p9), %v892_v16 }
  0x26   : > { %s368_s2 = scalar_lea.vmem (!%p360_p9), [#allocation2], %s754_s28  ;;  %p415_p11 = scmp.lt.s32.totalorder (!%p360_p9), %s874_s4, 1 }
  0x27   : > { %v430_v17 = vld [vmem:[%s368_s2 + $0x8] sm:$0xff] (!%p360_p9)  ;;  %v429_v19 = vld [vmem:[%s368_s2] sm:$0xff] (!%p360_p9)  ;;  %v432_v22 = vld [vmem:[%s368_s2 + $0x18] sm:$0xff] (!%p360_p9) }
  0x28   : > { %v434_v18 = vld [vmem:[%s368_s2 + $0x28] sm:$0xff] (!%p360_p9)  ;;  %v433_v21 = vld [vmem:[%s368_s2 + $0x20] sm:$0xff] (!%p360_p9)  ;;  %v436_v23 = vld [vmem:[%s368_s2 + $0x38] sm:$0xff] (!%p360_p9) }
  0x29   : > { %v763_v20 = vpack.c.bf16 (!%p360_p9), %v434_v18, %v430_v17  ;;  %v765_v24 = vpack.c.bf16 (!%p360_p9), %v433_v21, %v429_v19  ;;  %v771_v25 = vpack.c.bf16 (!%p360_p9), %v436_v23, %v432_v22  ;;  %v431_v26 = vld [vmem:[%s368_s2 + $0x10] sm:$0xff] (!%p360_p9)  ;;  %v438_v28 = vld [vmem:[%s368_s2 + $0x48] sm:$0xff] (!%p360_p9)  ;;  %v437_v31 = vld [vmem:[%s368_s2 + $0x40] sm:$0xff] (!%p360_p9) }
  0x2a   : > { %v435_v27 = vld [vmem:[%s368_s2 + $0x30] sm:$0xff] (!%p360_p9)  ;;  %v442_v30 = vld [vmem:[%s368_s2 + $0x68] sm:$0xff] (!%p360_p9)  ;;  %v441_v32 = vld [vmem:[%s368_s2 + $0x60] sm:$0xff] (!%p360_p9) }
  0x2b   : > { %764 = vmatprep.subr.bf16.mxu0 (!%p360_p9), %v763_v20  ;;  %v773_v29 = vpack.c.bf16 (!%p360_p9), %v435_v27, %v431_v26  ;;  %772 = vmatprep.subr.bf16.mxu1 (!%p360_p9), %v771_v25  ;;  %v767_v33 = vpack.c.bf16 (!%p360_p9), %v442_v30, %v438_v28  ;;  %v769_v34 = vpack.c.bf16 (!%p360_p9), %v441_v32, %v437_v31  ;;  %v440_v35 = vld [vmem:[%s368_s2 + $0x58] sm:$0xff] (!%p360_p9)  ;;  %v439_v37 = vld [vmem:[%s368_s2 + $0x50] sm:$0xff] (!%p360_p9) }
  0x2c   : > { %766 = vmatpush1.bf16.msra.mxu0 %v765_v24  ;;  %v444_v36 = vld [vmem:[%s368_s2 + $0x78] sm:$0xff]  ;;  %v443_v39 = vld [vmem:[%s368_s2 + $0x70] sm:$0xff]  ;;  %s1081_s30 = smov (!%p413_p10, %s878_s30), 1  ;;  %s1083_s4 = smov (!%p415_p11, %s874_s4), 1 }
  0x2d   : > { %774 = vmatpush1.bf16.msra.mxu1 %v773_v29  ;;  %v775_v38 = vpack.c.bf16 %v444_v36, %v440_v35  ;;  %768 = vmatprep.subr.bf16.mxu0 %v767_v33  ;;  %v777_v40 = vpack.c.bf16 %v443_v39, %v439_v37  ;;  %s755_s13 = sshll.u32 %s1081_s30, 1 }
  0x2e   : > { %s418_s14 = sadd.s32 %s755_s13, %s1083_s4 }
  0x2f   : > { %776 = vmatprep.subr.bf16.mxu1 %v775_v38  ;;  %s756_s15 = sshll.u32 %s418_s14, 3 }
  0x30   : > { %770 = vmatpush1.bf16.msra.mxu0 %v769_v34  ;;  %s420_s19 = scalar_lea.vmem %s1066_s8, %s756_s15  ;;  %s428_s22 = scalar_lea.vmem %s1067_s9, %s756_s15 }
  0x31   : > { %778 = vmatpush1.bf16.msra.mxu1 %v777_v40 }
  0x33   : > { %759 = vmatmul.mubr.msk.f32.vlgmr.msra.gmra.mrb[0].mxu0 %vm446_vm0, %v445_v41 }
  0x34   : > { %760 = vmatmul.mubr.msk.f32.vlgmr.msra.gmra.mrb[0].mxu1 %vm446_vm0, %v445_v41 }
 0x106   : > { %v516_v42 = vpop.f32.mrb[0].mxu0 }
 0x107   : > { %v599_v43 = vmul.f32 %v516_v42, %v516_v42  ;;  %v518_v44 = vpop.f32.mrb[1].mxu0  ;;  %v587_v45 = vpop.f32.mrb[0].mxu1 }
 0x108   : > { %v592_v46 = vadd.f32 %v518_v44, %v516_v42  ;;  %v600_v47 = vmul.f32 %v518_v44, %v518_v44  ;;  %v601_v48 = vmul.f32 %v587_v45, %v587_v45  ;;  %v589_v49 = vpop.f32.mrb[1].mxu1 }
 0x109   : > { %v602_v52 = vmul.f32 %v589_v49, %v589_v49 }
 0x10a   : > { %v603_v50 = vadd.f32 %v600_v47, %v599_v43  ;;  %v593_v51 = vadd.f32 %v592_v46, %v587_v45 }
 0x10c   : > { %v594_v53 = vadd.f32 %v593_v51, %v589_v49  ;;  %v604_v54 = vadd.f32 %v603_v50, %v601_v48 }
 0x10e   : > { %595 = vadd.xlane.f32.xlu0 %v594_v53  ;;  %v605_v55 = vadd.f32 %v604_v54, %v602_v52 }
 0x112   : > { %606 = vadd.xlane.f32.xlu0 %v605_v55 }
 0x19b   : > { %v596_v56 = vpop.xlane.xlu0 %595 }
 0x19c   : > { %598 = vst.msk [vmem:[%s420_s19] sm:$0xff] %vm597_vm1, %v596_v56 }
 0x19f   : > { %v607_v57 = vpop.xlane.xlu0 %606 }
 0x1a0   : > { %608 = vst.msk [vmem:[%s428_s22] sm:$0xff] %vm597_vm1, %v607_v57 }
 0x1a1 PF: > { %s20_s10 = sadd.s32 1, %s890_s10   ;;  %s1068_s29 = smov %s870_s3 }
 0x1a2   : > { %p17_p12 = scmp.ge.s32.totalorder %s20_s10, 6   ;;  %s1069_s3 = smov %s994_s16 }
 0x1a3   : > { %s1070_s4 = smov %s882_s5  ;;  %s1071_s30 = smov %s886_s6 }
 0x1a4   : > { %s1072_s5 = smov %s1075_s7  ;;  %s1073_s6 = smov %s1079_s11 }
 0x1a5   :  { %19 = sbr.rel (!%p17_p12) target bundleno = 4 (0x4), region = 122 }

// kernel: res_bottleneck.5
= control target key start
LH: loop header
LB: loop body
LE: loop exit
PB: predicated region body
PF: predicated region fallthrough
CT: control target
= control target key end

     0   :  { %s1119_s30 = smov 0   ;;  %s1121_s3 = smov 0   ;;  %s1243_s0 = inlined_call_operand.vmem [shape: f32[2,32,1024], index: 0, kind: input, shape index: {}]   ;;  %s1244_s1 = inlined_call_operand.vmem [shape: f32[8,32], index: 1, kind: input, shape index: {}]   ;;  %s1245_s2 = inlined_call_operand.vmem [shape: f32[8,8], index: 2, kind: input, shape index: {}]   ;;  %s1246_s3 = inlined_call_operand.vmem [shape: f32[32,8], index: 3, kind: input, shape index: {}]   ;;  %s1247_s4 = inlined_call_operand.vmem [shape: f32[8,1], index: 4, kind: input, shape index: {}]   ;;  %s1248_s5 = inlined_call_operand.vmem [shape: f32[8,1], index: 5, kind: input, shape index: {}]   ;;  %s1249_s6 = inlined_call_operand.vmem [shape: f32[8,1], index: 6, kind: input, shape index: {}, may-alias: {6,7}]   ;;  %s1250_s7 = inlined_call_operand.vmem [shape: f32[8,1], index: 7, kind: input, shape index: {}, may-alias: {6,7}]   ;;  %s1251_s8 = inlined_call_operand.vmem [shape: f32[2,2,8,1], index: 8, kind: output, shape index: {0}]   ;;  %s1252_s9 = inlined_call_operand.vmem [shape: f32[2,2,8,1], index: 9, kind: output, shape index: {1}]  }
   0x1   :  { %s1123_s10 = smov 0   ;;  %s1125_s11 = smov 0  }
   0x2   :  { %s1127_s12 = smov 0   ;;  %s1129_s6 = smov 0  }
   0x3   :  { %s1131_s13 = smov 0  }
   0x4 LB: > { %s29_s7 = sadd.s32 1, %s1057_s12  ;;  %s32_s14 = sadd.s32 1, %s1061_s6  ;;  %s1065_s13 = sphi %s1131_s13, %s20_s13   ;;  %s1061_s6 = sphi %s1129_s6, %s1258_s6   ;;  %s1057_s12 = sphi %s1127_s12, %s1257_s12   ;;  %s1053_s11 = sphi %s1125_s11, %s1256_s11   ;;  %s1049_s10 = sphi %s1123_s10, %s1255_s10   ;;  %s1045_s3 = sphi %s1121_s3, %s1254_s3   ;;  %s1041_s30 = sphi %s1119_s30, %s1253_s30  }
   0x5   : > { %p30_p0 = scmp.ge.s32.totalorder %s29_s7, 2  ;;  %p48_p1 = scmp.ne.s32.totalorder %s1045_s3, %s1041_s30 }
   0x6   : > { %p49_p2 = scmp.eq.s32.totalorder %s1065_s13, 0  ;;  %s41_s18 = sadd.s32 1, %s1045_s3 }
   0x7   : > { %s1260_s7 = smov (%p30_p0, %s29_s7), 0  ;;  %s1262_s14 = smov (!%p30_p0, %s32_s14), %s1061_s6 }
   0x8   : > { %p50_p3 = por %p49_p2, %p48_p1  ;;  %p34_p4 = scmp.ge.s32.totalorder %s1262_s14, 2 }
   0x9   : > { %s37_s15 = ssub.s32 %s1057_s12, %s1260_s7  ;;  %p919_p6 = scmp.ge.s32.totalorder %s1065_s13, 4 }
   0xa   : > { %s1264_s14 = smov (%p34_p4, %s1262_s14), 0 }
   0xb   : > { %s36_s16 = ssub.s32 %s1061_s6, %s1264_s14  ;;  %298 = sbr.rel (%p919_p6) target bundleno = 33 (0x21), region = 44 }
   0xc   : > { %s38_s17 = sor.u32 %s37_s15, %s36_s16 }
   0xd   : > { %p39_p5 = scmp.eq.s32.totalorder %s38_s17, 0 }
   0xf   : > { %s1170_s19 = scalar_select %p39_p5, %s1045_s3, %s41_s18  }
  0x12   : > { %301 = sbr.rel (!%p50_p3) target bundleno = 33 (0x21), region = 48  ;;  %s303_s20 = sand.u32 (%p50_p3), 1, %s1045_s3  }
  0x13   : > { %s921_s21 = sshll.u32 (%p50_p3), %s1057_s12, 2  ;;  %s920_s22 = sshll.u32 (%p50_p3), %s303_s20, 7 }
  0x14   : > { %s922_s23 = sshll.u32 (%p50_p3), %s1061_s6, 5  ;;  %s305_s29 = scalar_lea.vmem (%p50_p3), [#allocation2], %s920_s22 }
  0x15   : > { %s308_s24 = sadd.s32 (%p50_p3), %s922_s23, %s921_s21 }
  0x16   : > { %s923_s25 = sshll.u32 (%p50_p3), %s308_s24, 3 }
  0x17   : > { %s1179_s28 = scalar_lea.vmem (%p50_p3), %s1243_s0, %s923_s25 }
  0x18   : > { %v323_v0 = vld [vmem:[%s1179_s28] sm:$0xff] (%p50_p3)  ;;  %v325_v1 = vld [vmem:[%s1179_s28 + $0x8] sm:$0xff] (%p50_p3)  ;;  %v327_v2 = vld [vmem:[%s1179_s28 + $0x10] sm:$0xff] (%p50_p3) }
  0x19   : > { %324 = vst [vmem:[%s305_s29] sm:$0xff] %v323_v0  ;;  %326 = vst [vmem:[%s305_s29 + $0x8] sm:$0xff] %v325_v1  ;;  %v329_v3 = vld [vmem:[%s1179_s28 + $0x18] sm:$0xff]  ;;  %v331_v4 = vld [vmem:[%s1179_s28 + $0x40] sm:$0xff] }
  0x1a   : > { %328 = vst [vmem:[%s305_s29 + $0x10] sm:$0xff] %v327_v2  ;;  %v333_v5 = vld [vmem:[%s1179_s28 + $0x48] sm:$0xff]  ;;  %330 = vst [vmem:[%s305_s29 + $0x18] sm:$0xff] %v329_v3  ;;  %v335_v6 = vld [vmem:[%s1179_s28 + $0x50] sm:$0xff] }
  0x1b   : > { %332 = vst [vmem:[%s305_s29 + $0x20] sm:$0xff] %v331_v4  ;;  %334 = vst [vmem:[%s305_s29 + $0x28] sm:$0xff] %v333_v5  ;;  %v337_v7 = vld [vmem:[%s1179_s28 + $0x58] sm:$0xff]  ;;  %v339_v8 = vld [vmem:[%s1179_s28 + $0x80] sm:$0xff] }
  0x1c   : > { %336 = vst [vmem:[%s305_s29 + $0x30] sm:$0xff] %v335_v6  ;;  %338 = vst [vmem:[%s305_s29 + $0x38] sm:$0xff] %v337_v7  ;;  %v341_v9 = vld [vmem:[%s1179_s28 + $0x88] sm:$0xff]  ;;  %v343_v10 = vld [vmem:[%s1179_s28 + $0x90] sm:$0xff] }
  0x1d   : > { %340 = vst [vmem:[%s305_s29 + $0x40] sm:$0xff] %v339_v8  ;;  %v345_v11 = vld [vmem:[%s1179_s28 + $0x98] sm:$0xff]  ;;  %342 = vst [vmem:[%s305_s29 + $0x48] sm:$0xff] %v341_v9  ;;  %v347_v12 = vld [vmem:[%s1179_s28 + $0xc0] sm:$0xff] }
  0x1e   : > { %344 = vst [vmem:[%s305_s29 + $0x50] sm:$0xff] %v343_v10  ;;  %346 = vst [vmem:[%s305_s29 + $0x58] sm:$0xff] %v345_v11  ;;  %v349_v13 = vld [vmem:[%s1179_s28 + $0xc8] sm:$0xff]  ;;  %v351_v14 = vld [vmem:[%s1179_s28 + $0xd0] sm:$0xff] }
  0x1f   : > { %348 = vst [vmem:[%s305_s29 + $0x60] sm:$0xff] %v347_v12  ;;  %350 = vst [vmem:[%s305_s29 + $0x68] sm:$0xff] %v349_v13  ;;  %v353_v15 = vld [vmem:[%s1179_s28 + $0xd8] sm:$0xff] }
  0x20   : > { %352 = vst [vmem:[%s305_s29 + $0x70] sm:$0xff] %v351_v14  ;;  %354 = vst [vmem:[%s305_s29 + $0x78] sm:$0xff] %v353_v15 }
  0x21 PF: > { %p924_p7 = scmp.ge.s32.totalorder %s1065_s13, 1  ;;  %p359_p8 = scmp.lt.s32.totalorder %s1065_s13, 5 }
  0x23   : > { %p360_p9 = pnand %p924_p7, %p359_p8 }
  0x24   : > { %s366_s15 = sand.u32 (!%p360_p9), 1, %s1041_s30   ;;  %v592_v16 = vld [vmem:[%s1247_s4] sm:$0xff] (!%p360_p9)  ;;  %v1067_v17 = vmov (!%p360_p9), 0.0   ;;  %v1068_v18 = vmov (!%p360_p9), 0   ;;  %vm446_vm0 = vcmask (!%p360_p9), 261120   ;;  %vm617_vm1 = vcmask (!%p360_p9), 64512  }
  0x25   : > { %363 = sbr.rel (%p360_p9) target bundleno = 638 (0x27e), region = 71  ;;  %s925_s18 = sshll.u32 (!%p360_p9), %s366_s15, 7  ;;  %514 = vmatprep.mubr.f32.mxu0 (!%p360_p9), %v1067_v17  ;;  %585 = vmatprep.mubr.f32.mxu1 (!%p360_p9), %v1067_v17  ;;  %v602_v22 = vld [vmem:[%s1248_s5] sm:$0xff] (!%p360_p9)  ;;  %vm768_vm2 = vcmask (!%p360_p9), 7168  }
  0x26   : > { %1010 = vset.pattern.permute.xlu0 (!%p360_p9), %v1068_v18  ;;  %s368_s20 = scalar_lea.vmem (!%p360_p9), [#allocation2], %s925_s18  ;;  %v445_v44 = vld [vmem:[%s1244_s1] sm:$0xff] (!%p360_p9)  ;;  %p413_p10 = scmp.lt.s32.totalorder (!%p360_p9), %s1053_s11, 1 }
  0x27   : > { %v430_v19 = vld [vmem:[%s368_s20 + $0x8] sm:$0xff] (!%p360_p9)  ;;  %v432_v21 = vld [vmem:[%s368_s20 + $0x18] sm:$0xff] (!%p360_p9)  ;;  %595 = vperm.xlu0 (!%p360_p9), %1010, %v592_v16   ;;  %v429_v25 = vld [vmem:[%s368_s20] sm:$0xff] (!%p360_p9)  ;;  %p415_p11 = scmp.lt.s32.totalorder (!%p360_p9), %s1049_s10, 1 }
  0x28   : > { %v434_v20 = vld [vmem:[%s368_s20 + $0x28] sm:$0xff] (!%p360_p9)  ;;  %v436_v24 = vld [vmem:[%s368_s20 + $0x38] sm:$0xff] (!%p360_p9)  ;;  %v433_v26 = vld [vmem:[%s368_s20 + $0x20] sm:$0xff] (!%p360_p9) }
  0x29   : > { %v936_v23 = vpack.c.bf16 (!%p360_p9), %v434_v20, %v430_v19  ;;  %v944_v27 = vpack.c.bf16 (!%p360_p9), %v436_v24, %v432_v21  ;;  %v938_v28 = vpack.c.bf16 (!%p360_p9), %v433_v26, %v429_v25  ;;  %v431_v29 = vld [vmem:[%s368_s20 + $0x10] sm:$0xff] (!%p360_p9)  ;;  %v438_v31 = vld [vmem:[%s368_s20 + $0x48] sm:$0xff] (!%p360_p9)  ;;  %v440_v34 = vld [vmem:[%s368_s20 + $0x58] sm:$0xff] (!%p360_p9) }
  0x2a   : > { %v435_v30 = vld [vmem:[%s368_s20 + $0x30] sm:$0xff] (!%p360_p9)  ;;  %v442_v33 = vld [vmem:[%s368_s20 + $0x68] sm:$0xff] (!%p360_p9)  ;;  %v444_v35 = vld [vmem:[%s368_s20 + $0x78] sm:$0xff] (!%p360_p9) }
  0x2b   : > { %937 = vmatprep.subr.bf16.mxu0 (!%p360_p9), %v936_v23  ;;  %v946_v32 = vpack.c.bf16 (!%p360_p9), %v435_v30, %v431_v29  ;;  %945 = vmatprep.subr.bf16.mxu1 (!%p360_p9), %v944_v27  ;;  %v940_v36 = vpack.c.bf16 (!%p360_p9), %v442_v33, %v438_v31  ;;  %v948_v37 = vpack.c.bf16 (!%p360_p9), %v444_v35, %v440_v34  ;;  %v437_v38 = vld [vmem:[%s368_s20 + $0x40] sm:$0xff] (!%p360_p9)  ;;  %v439_v40 = vld [vmem:[%s368_s20 + $0x50] sm:$0xff] (!%p360_p9) }
  0x2c   : > { %939 = vmatpush1.bf16.msra.mxu0 %v938_v28  ;;  %v441_v39 = vld [vmem:[%s368_s20 + $0x60] sm:$0xff]  ;;  %v443_v42 = vld [vmem:[%s368_s20 + $0x70] sm:$0xff]  ;;  %605 = vperm.xlu0 %1010, %v602_v22   ;;  %s1266_s11 = smov (!%p413_p10, %s1053_s11), 1  ;;  %s1268_s10 = smov (!%p415_p11, %s1049_s10), 1 }
  0x2d   : > { %947 = vmatpush1.bf16.msra.mxu1 %v946_v32  ;;  %v942_v41 = vpack.c.bf16 %v441_v39, %v437_v38  ;;  %941 = vmatprep.subr.bf16.mxu0 %v940_v36  ;;  %v950_v43 = vpack.c.bf16 %v443_v42, %v439_v40  ;;  %v616_v62 = vld [vmem:[%s1245_s2] sm:$0xff]  ;;  %s926_s26 = sshll.u32 %s1266_s11, 1 }
  0x2e   : > { %949 = vmatprep.subr.bf16.mxu1 %v948_v37  ;;  %s418_s27 = sadd.s32 %s926_s26, %s1268_s10 }
  0x2f   : > { %s927_s28 = sshll.u32 %s418_s27, 3 }
  0x30   : > { %943 = vmatpush1.bf16.msra.mxu0 %v942_v41  ;;  %s420_s16 = scalar_lea.vmem %s1251_s8, %s927_s28  ;;  %s428_s20 = scalar_lea.vmem %s1252_s9, %s927_s28 }
  0x31   : > { %951 = vmatpush1.bf16.msra.mxu1 %v950_v43 }
  0x33   : > { %930 = vmatmul.mubr.msk.f32.vlgmr.msra.gmra.mrb[0].mxu0 %vm446_vm0, %v445_v44 }
  0x34   : > { %931 = vmatmul.mubr.msk.f32.vlgmr.msra.gmra.mrb[0].mxu1 %vm446_vm0, %v445_v44  ;;  %685 = vmatprep.mubr.f32.mxu0 %v1067_v17 }
  0x35   : > { %756 = vmatprep.mubr.f32.mxu1 %v1067_v17 }
  0xa6   : > { %v596_v45 = vpop.permute.xlu0 %595 }
  0xab   : > { %v606_v50 = vpop.permute.xlu0 %605 }
 0x106   : > { %v516_v46 = vpop.f32.mrb[0].mxu0 }
 0x107   : > { %v598_v47 = vmul.f32 %v596_v45, %v516_v46  ;;  %v587_v48 = vpop.f32.mrb[0].mxu1  ;;  %v518_v49 = vpop.f32.mrb[1].mxu0 }
 0x108   : > { %v600_v51 = vmul.f32 %v596_v45, %v587_v48  ;;  %v599_v52 = vmul.f32 %v596_v45, %v518_v49  ;;  %v589_v53 = vpop.f32.mrb[1].mxu1 }
 0x109   : > { %v608_v54 = vadd.f32 %v606_v50, %v598_v47  ;;  %v601_v55 = vmul.f32 %v596_v45, %v589_v53 }
 0x10a   : > { %v610_v56 = vadd.f32 %v606_v50, %v600_v51  ;;  %v609_v57 = vadd.f32 %v606_v50, %v599_v52 }
 0x10b   : > { %v611_v58 = vadd.f32 %v606_v50, %v601_v55  ;;  %v612_v60 = vmax.f32 %v608_v54, 0.0 }
 0x10c   : > { %v613_v59 = vmax.f32 %v609_v57, 0.0  ;;  %v614_v63 = vmax.f32 %v610_v56, 0.0 }
 0x10d   : > { %v615_v61 = vmax.f32 %v611_v58, 0.0 }
 0x10e   : > { %621 = vmatprep.subr.mxu0 %v613_v59 }
 0x10f   : > { %692 = vmatprep.subr.mxu1 %v615_v61  ;;  %622 = vmatpush1.msra.mxu0 %v612_v60 }
 0x110   : > { %693 = vmatpush1.msra.mxu1 %v614_v63  ;;  %932 = vmatmul.mubr.msk.f32.vlgmr.msra.gmra.mrb[2].mxu0 %vm617_vm1, %v616_v62 }
 0x111   : > { %933 = vmatmul.mubr.msk.f32.vlgmr.msra.gmra.mrb[2].mxu1 %vm617_vm1, %v616_v62 }
 0x1e3   : > { %v687_v0 = vpop.f32.mrb[2].mxu0 }
 0x1e4   : > { %v770_v1 = vmul.f32 %v687_v0, %v687_v0  ;;  %v689_v2 = vpop.f32.mrb[3].mxu0  ;;  %v758_v3 = vpop.f32.mrb[2].mxu1 }
 0x1e5   : > { %v763_v4 = vadd.f32 %v689_v2, %v687_v0  ;;  %v771_v5 = vmul.f32 %v689_v2, %v689_v2  ;;  %v772_v6 = vmul.f32 %v758_v3, %v758_v3  ;;  %v760_v7 = vpop.f32.mrb[3].mxu1 }
 0x1e6   : > { %v773_v10 = vmul.f32 %v760_v7, %v760_v7 }
 0x1e7   : > { %v774_v8 = vadd.f32 %v771_v5, %v770_v1  ;;  %v764_v9 = vadd.f32 %v763_v4, %v758_v3 }
 0x1e9   : > { %v765_v11 = vadd.f32 %v764_v9, %v760_v7  ;;  %v775_v12 = vadd.f32 %v774_v8, %v772_v6 }
 0x1eb   : > { %766 = vadd.xlane.f32.xlu1 %v765_v11  ;;  %v776_v13 = vadd.f32 %v775_v12, %v773_v10 }
 0x1ef   : > { %777 = vadd.xlane.f32.xlu1 %v776_v13 }
 0x278   : > { %v767_v14 = vpop.xlane.xlu1 %766 }
 0x279   : > { %769 = vst.msk [vmem:[%s420_s16] sm:$0xff] %vm768_vm2, %v767_v14 }
 0x27c   : > { %v778_v15 = vpop.xlane.xlu1 %777 }
 0x27d   : > { %779 = vst.msk [vmem:[%s428_s20] sm:$0xff] %vm768_vm2, %v778_v15 }
 0x27e PF: > { %s20_s13 = sadd.s32 1, %s1065_s13   ;;  %s1253_s30 = smov %s1045_s3 }
 0x27f   : > { %p17_p12 = scmp.ge.s32.totalorder %s20_s13, 6   ;;  %s1254_s3 = smov %s1170_s19 }
 0x280   : > { %s1255_s10 = smov %s1057_s12  ;;  %s1256_s11 = smov %s1061_s6 }
 0x281   : > { %s1257_s12 = smov %s1260_s7  ;;  %s1258_s6 = smov %s1264_s14 }
 0x282   :  { %19 = sbr.rel (!%p17_p12) target bundleno = 4 (0x4), region = 122 }

// kernel: res_bottleneck.6
= control target key start
LH: loop header
LB: loop body
LE: loop exit
PB: predicated region body
PF: predicated region fallthrough
CT: control target
= control target key end

     0   :  { %s1412_s30 = smov 0   ;;  %s1414_s10 = smov 0   ;;  %s1584_s0 = inlined_call_operand.vmem [shape: f32[2,32,1024], index: 0, kind: input, shape index: {}]   ;;  %s1585_s1 = inlined_call_operand.vmem [shape: f32[8,32], index: 1, kind: input, shape index: {}]   ;;  %s1586_s2 = inlined_call_operand.vmem [shape: f32[8,8], index: 2, kind: input, shape index: {}]   ;;  %s1587_s3 = inlined_call_operand.vmem [shape: f32[32,8], index: 3, kind: input, shape index: {}]   ;;  %s1588_s4 = inlined_call_operand.vmem [shape: f32[8,1], index: 4, kind: input, shape index: {}]   ;;  %s1589_s5 = inlined_call_operand.vmem [shape: f32[8,1], index: 5, kind: input, shape index: {}]   ;;  %s1590_s6 = inlined_call_operand.vmem [shape: f32[8,1], index: 6, kind: input, shape index: {}]   ;;  %s1591_s7 = inlined_call_operand.vmem [shape: f32[8,1], index: 7, kind: input, shape index: {}]   ;;  %s1592_s8 = inlined_call_operand.vmem [shape: f32[2,2,32,1], index: 8, kind: output, shape index: {0}]   ;;  %s1593_s9 = inlined_call_operand.vmem [shape: f32[2,2,32,1], index: 9, kind: output, shape index: {1}]  }
   0x1   :  { %s1416_s11 = smov 0   ;;  %s1418_s12 = smov 0  }
   0x2   :  { %s1420_s13 = smov 0   ;;  %s1422_s14 = smov 0  }
   0x3   :  { %s1424_s15 = smov 0  }
   0x4 LB: > { %s29_s16 = sadd.s32 1, %s1350_s13  ;;  %s32_s17 = sadd.s32 1, %s1354_s14  ;;  %s1358_s15 = sphi %s1424_s15, %s20_s15   ;;  %s1354_s14 = sphi %s1422_s14, %s1602_s14   ;;  %s1350_s13 = sphi %s1420_s13, %s1601_s13   ;;  %s1346_s12 = sphi %s1418_s12, %s1600_s12   ;;  %s1342_s11 = sphi %s1416_s11, %s1599_s11   ;;  %s1338_s10 = sphi %s1414_s10, %s1598_s10   ;;  %s1334_s30 = sphi %s1412_s30, %s1597_s30  }
   0x5   : > { %p30_p0 = scmp.ge.s32.totalorder %s29_s16, 2  ;;  %p48_p1 = scmp.ne.s32.totalorder %s1338_s10, %s1334_s30 }
   0x6   : > { %p49_p2 = scmp.eq.s32.totalorder %s1358_s15, 0  ;;  %s41_s21 = sadd.s32 1, %s1338_s10 }
   0x7   : > { %s1604_s16 = smov (%p30_p0, %s29_s16), 0  ;;  %s1606_s17 = smov (!%p30_p0, %s32_s17), %s1354_s14 }
   0x8   : > { %p50_p3 = por %p49_p2, %p48_p1  ;;  %p34_p4 = scmp.ge.s32.totalorder %s1606_s17, 2 }
   0x9   : > { %s37_s18 = ssub.s32 %s1350_s13, %s1604_s16  ;;  %p1201_p6 = scmp.ge.s32.totalorder %s1358_s15, 4 }
   0xa   : > { %s1608_s17 = smov (%p34_p4, %s1606_s17), 0 }
   0xb   : > { %1595 = sst [smem:[#allocation3_spill]] %s1608_s17  ;;  %s36_s19 = ssub.s32 %s1354_s14, %s1608_s17 }
   0xc   : > { %s38_s20 = sor.u32 %s37_s18, %s36_s19  ;;  %298 = sbr.rel (%p1201_p6) target bundleno = 34 (0x22), region = 44 }
   0xd   : > { %p39_p5 = scmp.eq.s32.totalorder %s38_s20, 0 }
   0xf   : > { %s1463_s22 = scalar_select %p39_p5, %s1338_s10, %s41_s21  }
  0x13   : > { %301 = sbr.rel (!%p50_p3) target bundleno = 34 (0x22), region = 48  ;;  %s303_s23 = sand.u32 (%p50_p3), 1, %s1338_s10  }
  0x14   : > { %s1203_s24 = sshll.u32 (%p50_p3), %s1350_s13, 2  ;;  %s1202_s25 = sshll.u32 (%p50_p3), %s303_s23, 7 }
  0x15   : > { %s1204_s26 = sshll.u32 (%p50_p3), %s1354_s14, 5  ;;  %s305_s19 = scalar_lea.vmem (%p50_p3), [#allocation2], %s1202_s25 }
  0x16   : > { %s308_s27 = sadd.s32 (%p50_p3), %s1204_s26, %s1203_s24 }
  0x17   : > { %s1205_s28 = sshll.u32 (%p50_p3), %s308_s27, 3 }
  0x18   : > { %s1472_s18 = scalar_lea.vmem (%p50_p3), %s1584_s0, %s1205_s28 }
  0x19   : > { %v323_v0 = vld [vmem:[%s1472_s18] sm:$0xff] (%p50_p3)  ;;  %v325_v1 = vld [vmem:[%s1472_s18 + $0x8] sm:$0xff] (%p50_p3)  ;;  %v327_v2 = vld [vmem:[%s1472_s18 + $0x10] sm:$0xff] (%p50_p3) }
  0x1a   : > { %324 = vst [vmem:[%s305_s19] sm:$0xff] %v323_v0  ;;  %326 = vst [vmem:[%s305_s19 + $0x8] sm:$0xff] %v325_v1  ;;  %v329_v3 = vld [vmem:[%s1472_s18 + $0x18] sm:$0xff]  ;;  %v331_v4 = vld [vmem:[%s1472_s18 + $0x40] sm:$0xff] }
  0x1b   : > { %328 = vst [vmem:[%s305_s19 + $0x10] sm:$0xff] %v327_v2  ;;  %v333_v5 = vld [vmem:[%s1472_s18 + $0x48] sm:$0xff]  ;;  %330 = vst [vmem:[%s305_s19 + $0x18] sm:$0xff] %v329_v3  ;;  %v335_v6 = vld [vmem:[%s1472_s18 + $0x50] sm:$0xff] }
  0x1c   : > { %332 = vst [vmem:[%s305_s19 + $0x20] sm:$0xff] %v331_v4  ;;  %334 = vst [vmem:[%s305_s19 + $0x28] sm:$0xff] %v333_v5  ;;  %v337_v7 = vld [vmem:[%s1472_s18 + $0x58] sm:$0xff]  ;;  %v339_v8 = vld [vmem:[%s1472_s18 + $0x80] sm:$0xff] }
  0x1d   : > { %336 = vst [vmem:[%s305_s19 + $0x30] sm:$0xff] %v335_v6  ;;  %338 = vst [vmem:[%s305_s19 + $0x38] sm:$0xff] %v337_v7  ;;  %v341_v9 = vld [vmem:[%s1472_s18 + $0x88] sm:$0xff]  ;;  %v343_v10 = vld [vmem:[%s1472_s18 + $0x90] sm:$0xff] }
  0x1e   : > { %340 = vst [vmem:[%s305_s19 + $0x40] sm:$0xff] %v339_v8  ;;  %v345_v11 = vld [vmem:[%s1472_s18 + $0x98] sm:$0xff]  ;;  %342 = vst [vmem:[%s305_s19 + $0x48] sm:$0xff] %v341_v9  ;;  %v347_v12 = vld [vmem:[%s1472_s18 + $0xc0] sm:$0xff] }
  0x1f   : > { %344 = vst [vmem:[%s305_s19 + $0x50] sm:$0xff] %v343_v10  ;;  %346 = vst [vmem:[%s305_s19 + $0x58] sm:$0xff] %v345_v11  ;;  %v349_v13 = vld [vmem:[%s1472_s18 + $0xc8] sm:$0xff]  ;;  %v351_v14 = vld [vmem:[%s1472_s18 + $0xd0] sm:$0xff] }
  0x20   : > { %348 = vst [vmem:[%s305_s19 + $0x60] sm:$0xff] %v347_v12  ;;  %350 = vst [vmem:[%s305_s19 + $0x68] sm:$0xff] %v349_v13  ;;  %v353_v15 = vld [vmem:[%s1472_s18 + $0xd8] sm:$0xff] }
  0x21   : > { %352 = vst [vmem:[%s305_s19 + $0x70] sm:$0xff] %v351_v14  ;;  %354 = vst [vmem:[%s305_s19 + $0x78] sm:$0xff] %v353_v15 }
  0x22 PF: > { %p1206_p7 = scmp.ge.s32.totalorder %s1358_s15, 1  ;;  %p359_p8 = scmp.lt.s32.totalorder %s1358_s15, 5 }
  0x24   : > { %p360_p9 = pnand %p1206_p7, %p359_p8 }
  0x25   : > { %s366_s17 = sand.u32 (!%p360_p9), 1, %s1334_s30   ;;  %v596_v16 = vld [vmem:[%s1588_s4] sm:$0xff] (!%p360_p9)  ;;  %v1360_v17 = vmov (!%p360_p9), 0.0   ;;  %v1361_v18 = vmov (!%p360_p9), 0   ;;  %vm450_vm0 = vcmask (!%p360_p9), 261120   ;;  %vm621_vm1 = vcmask (!%p360_p9), 64512  }
  0x26   : > { %363 = sbr.rel (%p360_p9) target bundleno = 874 (0x36a), region = 71  ;;  %s1207_s23 = sshll.u32 (!%p360_p9), %s366_s17, 7  ;;  %518 = vmatprep.mubr.f32.mxu0 (!%p360_p9), %v1360_v17  ;;  %589 = vmatprep.mubr.f32.mxu1 (!%p360_p9), %v1360_v17  ;;  %v606_v22 = vld [vmem:[%s1589_s5] sm:$0xff] (!%p360_p9)  ;;  %vm1005_vm2 = vcmask (!%p360_p9), 7168  }
  0x27   : > { %1302 = vset.pattern.permute.xlu0 (!%p360_p9), %v1361_v18  ;;  %1303 = vset.pattern.permute.xlu1 (!%p360_p9), %v1361_v18  ;;  %s368_s24 = scalar_lea.vmem (!%p360_p9), [#allocation2], %s1207_s23  ;;  %v449_v44 = vld [vmem:[%s1585_s1] sm:$0xff] (!%p360_p9)  ;;  %p415_p10 = scmp.lt.s32.totalorder (!%p360_p9), %s1346_s12, 1 }
  0x28   : > { %v434_v19 = vld [vmem:[%s368_s24 + $0x8] sm:$0xff] (!%p360_p9)  ;;  %v436_v21 = vld [vmem:[%s368_s24 + $0x18] sm:$0xff] (!%p360_p9)  ;;  %599 = vperm.xlu0 (!%p360_p9), %1302, %v596_v16   ;;  %v433_v25 = vld [vmem:[%s368_s24] sm:$0xff] (!%p360_p9)  ;;  %p417_p11 = scmp.lt.s32.totalorder (!%p360_p9), %s1342_s11, 1 }
  0x29   : > { %v438_v20 = vld [vmem:[%s368_s24 + $0x28] sm:$0xff] (!%p360_p9)  ;;  %v440_v24 = vld [vmem:[%s368_s24 + $0x38] sm:$0xff] (!%p360_p9)  ;;  %v437_v26 = vld [vmem:[%s368_s24 + $0x20] sm:$0xff] (!%p360_p9) }
  0x2a   : > { %v1228_v23 = vpack.c.bf16 (!%p360_p9), %v438_v20, %v434_v19  ;;  %v1236_v27 = vpack.c.bf16 (!%p360_p9), %v440_v24, %v436_v21  ;;  %v1230_v28 = vpack.c.bf16 (!%p360_p9), %v437_v26, %v433_v25  ;;  %v435_v29 = vld [vmem:[%s368_s24 + $0x10] sm:$0xff] (!%p360_p9)  ;;  %v442_v31 = vld [vmem:[%s368_s24 + $0x48] sm:$0xff] (!%p360_p9)  ;;  %v444_v34 = vld [vmem:[%s368_s24 + $0x58] sm:$0xff] (!%p360_p9) }
  0x2b   : > { %v439_v30 = vld [vmem:[%s368_s24 + $0x30] sm:$0xff] (!%p360_p9)  ;;  %v446_v33 = vld [vmem:[%s368_s24 + $0x68] sm:$0xff] (!%p360_p9)  ;;  %v448_v35 = vld [vmem:[%s368_s24 + $0x78] sm:$0xff] (!%p360_p9) }
  0x2c   : > { %1229 = vmatprep.subr.bf16.mxu0 (!%p360_p9), %v1228_v23  ;;  %v1238_v32 = vpack.c.bf16 (!%p360_p9), %v439_v30, %v435_v29  ;;  %1237 = vmatprep.subr.bf16.mxu1 (!%p360_p9), %v1236_v27  ;;  %v1232_v36 = vpack.c.bf16 (!%p360_p9), %v446_v33, %v442_v31  ;;  %v1240_v37 = vpack.c.bf16 (!%p360_p9), %v448_v35, %v444_v34  ;;  %v441_v38 = vld [vmem:[%s368_s24 + $0x40] sm:$0xff] (!%p360_p9)  ;;  %v443_v40 = vld [vmem:[%s368_s24 + $0x50] sm:$0xff] (!%p360_p9)  ;;  %v794_v24 = vld [vmem:[%s1587_s3 + $0x18] sm:$0xff] (!%p360_p9) }
  0x2d   : > { %1231 = vmatpush1.bf16.msra.mxu0 %v1230_v28  ;;  %v445_v39 = vld [vmem:[%s368_s24 + $0x60] sm:$0xff]  ;;  %v447_v42 = vld [vmem:[%s368_s24 + $0x70] sm:$0xff]  ;;  %609 = vperm.xlu0 %1302, %v606_v22   ;;  %v792_v22 = vld [vmem:[%s1587_s3 + $0x8] sm:$0xff]  ;;  %s1610_s12 = smov (!%p415_p10, %s1346_s12), 1  ;;  %s1612_s11 = smov (!%p417_p11, %s1342_s11), 1 }
  0x2e   : > { %1239 = vmatpush1.bf16.msra.mxu1 %v1238_v32  ;;  %v1234_v41 = vpack.c.bf16 %v445_v39, %v441_v38  ;;  %1233 = vmatprep.subr.bf16.mxu0 %v1232_v36  ;;  %v1242_v43 = vpack.c.bf16 %v447_v42, %v443_v40  ;;  %v767_v45 = vld [vmem:[%s1590_s6] sm:$0xff]  ;;  %v793_v23 = vld [vmem:[%s1587_s3 + $0x10] sm:$0xff]  ;;  %s1208_s29 = sshll.u32 %s1612_s11, 2  ;;  %s1209_s18 = sshll.u32 %s1610_s12, 3 }
  0x2f   : > { %1241 = vmatprep.subr.bf16.mxu1 %v1240_v37  ;;  %770 = vperm.xlu1 %1303, %v767_v45   ;;  %v777_v46 = vld [vmem:[%s1591_s7] sm:$0xff]  ;;  %s421_s19 = sadd.s32 %s1209_s18, %s1208_s29 }
  0x30   : > { %v620_v0 = vld [vmem:[%s1586_s2] sm:$0xff]  ;;  %s1210_s17 = sshll.u32 %s421_s19, 3 }
  0x31   : > { %1235 = vmatpush1.bf16.msra.mxu0 %v1234_v41  ;;  %v791_v20 = vld [vmem:[%s1587_s3] sm:$0xff]  ;;  %s423_s23 = scalar_lea.vmem %s1592_s8, %s1210_s17  ;;  %s432_s30 = scalar_lea.vmem %s1593_s9, %s1210_s17 }
  0x32   : > { %1243 = vmatpush1.bf16.msra.mxu1 %v1242_v43 }
  0x33   : > { %780 = vperm.xlu1 %1303, %v777_v46  }
  0x34   : > { %1214 = vmatmul.mubr.msk.f32.vlgmr.msra.gmra.mrb[0].mxu0 %vm450_vm0, %v449_v44 }
  0x35   : > { %1215 = vmatmul.mubr.msk.f32.vlgmr.msra.gmra.mrb[0].mxu1 %vm450_vm0, %v449_v44  ;;  %689 = vmatprep.mubr.f32.mxu0 %v1360_v17 }
  0x36   : > { %760 = vmatprep.mubr.f32.mxu1 %v1360_v17 }
  0xa7   : > { %v600_v47 = vpop.permute.xlu0 %599 }
  0xac   : > { %v610_v52 = vpop.permute.xlu0 %609 }
  0xae   : > { %v771_v2 = vpop.permute.xlu1 %770 }
  0xb2   : > { %v781_v7 = vpop.permute.xlu1 %780 }
 0x107   : > { %v520_v48 = vpop.f32.mrb[0].mxu0 }
 0x108   : > { %v602_v49 = vmul.f32 %v600_v47, %v520_v48  ;;  %v591_v50 = vpop.f32.mrb[0].mxu1  ;;  %v522_v51 = vpop.f32.mrb[1].mxu0 }
 0x109   : > { %v604_v53 = vmul.f32 %v600_v47, %v591_v50  ;;  %v603_v54 = vmul.f32 %v600_v47, %v522_v51  ;;  %v593_v55 = vpop.f32.mrb[1].mxu1 }
 0x10a   : > { %v612_v56 = vadd.f32 %v610_v52, %v602_v49  ;;  %v605_v57 = vmul.f32 %v600_v47, %v593_v55 }
 0x10b   : > { %v614_v58 = vadd.f32 %v610_v52, %v604_v53  ;;  %v613_v59 = vadd.f32 %v610_v52, %v603_v54 }
 0x10c   : > { %v615_v60 = vadd.f32 %v610_v52, %v605_v57  ;;  %v616_v62 = vmax.f32 %v612_v56, 0.0 }
 0x10d   : > { %v617_v61 = vmax.f32 %v613_v59, 0.0  ;;  %v618_v1 = vmax.f32 %v614_v58, 0.0 }
 0x10e   : > { %v619_v63 = vmax.f32 %v615_v60, 0.0 }
 0x10f   : > { %625 = vmatprep.subr.mxu0 %v617_v61 }
 0x110   : > { %696 = vmatprep.subr.mxu1 %v619_v63  ;;  %626 = vmatpush1.msra.mxu0 %v616_v62 }
 0x111   : > { %697 = vmatpush1.msra.mxu1 %v618_v1  ;;  %1216 = vmatmul.mubr.msk.f32.vlgmr.msra.gmra.mrb[2].mxu0 %vm621_vm1, %v620_v0 }
 0x112   : > { %1217 = vmatmul.mubr.msk.f32.vlgmr.msra.gmra.mrb[2].mxu1 %vm621_vm1, %v620_v0  ;;  %871 = vmatprep.mubr.f32.mxu0 %v1360_v17 }
 0x113   : > { %960 = vmatprep.mubr.f32.mxu1 %v1360_v17 }
 0x1e4   : > { %v691_v3 = vpop.f32.mrb[2].mxu0 }
 0x1e5   : > { %v773_v4 = vmul.f32 %v771_v2, %v691_v3  ;;  %v762_v5 = vpop.f32.mrb[2].mxu1  ;;  %v693_v6 = vpop.f32.mrb[3].mxu0 }
 0x1e6   : > { %v775_v8 = vmul.f32 %v771_v2, %v762_v5  ;;  %v774_v9 = vmul.f32 %v771_v2, %v693_v6  ;;  %v764_v10 = vpop.f32.mrb[3].mxu1 }
 0x1e7   : > { %v783_v11 = vadd.f32 %v781_v7, %v773_v4  ;;  %v776_v12 = vmul.f32 %v771_v2, %v764_v10 }
 0x1e8   : > { %v785_v13 = vadd.f32 %v781_v7, %v775_v8  ;;  %v784_v14 = vadd.f32 %v781_v7, %v774_v9 }
 0x1e9   : > { %v786_v15 = vadd.f32 %v781_v7, %v776_v12  ;;  %v787_v18 = vmax.f32 %v783_v11, 0.0 }
 0x1ea   : > { %v788_v16 = vmax.f32 %v784_v14, 0.0  ;;  %v789_v21 = vmax.f32 %v785_v13, 0.0 }
 0x1eb   : > { %v790_v19 = vmax.f32 %v786_v15, 0.0 }
 0x1ec   : > { %807 = vmatprep.subr.mxu0 %v788_v16 }
 0x1ed   : > { %896 = vmatprep.subr.mxu1 %v790_v19  ;;  %808 = vmatpush1.msra.mxu0 %v787_v18 }
 0x1ee   : > { %897 = vmatpush1.msra.mxu1 %v789_v21  ;;  %1218 = vmatmul.mubr.msk.f32.vlgmr.msra.gmra.mrb[4].mxu0 %vm621_vm1, %v791_v20 }
 0x1ef   : > { %877 = vmatprep.mubr.f32.mxu0 %v1360_v17  ;;  %1222 = vmatmul.mubr.msk.f32.vlgmr.msra.gmra.mrb[4].mxu1 %vm621_vm1, %v791_v20 }
 0x1f0   : > { %966 = vmatprep.mubr.f32.mxu1 %v1360_v17 }
 0x1f2   : > { %1219 = vmatmul.mubr.msk.f32.gmra.mrb[6].mxu0 %vm621_vm1, %v792_v22 }
 0x1f3   : > { %1223 = vmatmul.mubr.msk.f32.gmra.mrb[6].mxu1 %vm621_vm1, %v792_v22  ;;  %883 = vmatprep.mubr.f32.mxu0 %v1360_v17 }
 0x1f4   : > { %972 = vmatprep.mubr.f32.mxu1 %v1360_v17 }
 0x1f6   : > { %1220 = vmatmul.mubr.msk.f32.gmra.mrb[8].mxu0 %vm621_vm1, %v793_v23 }
 0x1f7   : > { %889 = vmatprep.mubr.f32.mxu0 %v1360_v17  ;;  %1224 = vmatmul.mubr.msk.f32.gmra.mrb[8].mxu1 %vm621_vm1, %v793_v23 }
 0x1f8   : > { %978 = vmatprep.mubr.f32.mxu1 %v1360_v17 }
 0x1fa   : > { %1221 = vmatmul.mubr.msk.f32.gmra.mrb[10].mxu0 %vm621_vm1, %v794_v24 }
 0x1fb   : > { %1225 = vmatmul.mubr.msk.f32.gmra.mrb[10].mxu1 %vm621_vm1, %v794_v24 }
 0x2c1   : > { %v873_v25 = vpop.f32.mrb[4].mxu0 }
 0x2c2   : > { %v1010_v26 = vmul.f32 %v873_v25, %v873_v25  ;;  %v875_v27 = vpop.f32.mrb[5].mxu0  ;;  %v962_v28 = vpop.f32.mrb[4].mxu1 }
 0x2c3   : > { %v985_v29 = vadd.f32 %v875_v27, %v873_v25  ;;  %v1011_v30 = vmul.f32 %v875_v27, %v875_v27  ;;  %v964_v31 = vpop.f32.mrb[5].mxu1  ;;  %v1012_v32 = vmul.f32 %v962_v28, %v962_v28 }
 0x2c4   : > { %v1013_v43 = vmul.f32 %v964_v31, %v964_v31 }
 0x2c5   : > { %v1026_v33 = vadd.f32 %v1011_v30, %v1010_v26  ;;  %v986_v34 = vadd.f32 %v985_v29, %v962_v28  ;;  %v879_v35 = vpop.f32.mrb[6].mxu0 }
 0x2c6   : > { %v1014_v36 = vmul.f32 %v879_v35, %v879_v35  ;;  %v881_v37 = vpop.f32.mrb[7].mxu0  ;;  %v968_v38 = vpop.f32.mrb[6].mxu1 }
 0x2c7   : > { %v990_v39 = vadd.f32 %v881_v37, %v879_v35  ;;  %v1015_v17 = vmul.f32 %v881_v37, %v881_v37  ;;  %v1016_v40 = vmul.f32 %v968_v38, %v968_v38  ;;  %v970_v41 = vpop.f32.mrb[7].mxu1  ;;  %v987_v42 = vadd.f32 %v986_v34, %v964_v31 }
 0x2c8   : > { %v1027_v44 = vadd.f32 %v1026_v33, %v1012_v32  ;;  %v1017_v52 = vmul.f32 %v970_v41, %v970_v41 }
 0x2c9   : > { %v1031_v45 = vadd.f32 %v1015_v17, %v1014_v36  ;;  %v991_v46 = vadd.f32 %v990_v39, %v968_v38  ;;  %988 = vadd.xlane.f32.xlu0 %v987_v42  ;;  %v885_v47 = vpop.f32.mrb[8].mxu0 }
 0x2ca   : > { %v1028_v48 = vadd.f32 %v1027_v44, %v1013_v43  ;;  %v1018_v49 = vmul.f32 %v885_v47, %v885_v47  ;;  %v887_v50 = vpop.f32.mrb[9].mxu0  ;;  %v974_v51 = vpop.f32.mrb[8].mxu1 }
 0x2cb   : > { %v995_v53 = vadd.f32 %v887_v50, %v885_v47  ;;  %v1019_v54 = vmul.f32 %v887_v50, %v887_v50  ;;  %v1032_v55 = vadd.f32 %v1031_v45, %v1016_v40  ;;  %v976_v56 = vpop.f32.mrb[9].mxu1  ;;  %v1020_v57 = vmul.f32 %v974_v51, %v974_v51 }
 0x2cc   : > { %1029 = vadd.xlane.f32.xlu1 %v1028_v48  ;;  %v992_v58 = vadd.f32 %v991_v46, %v970_v41  ;;  %v1021_v1 = vmul.f32 %v976_v56, %v976_v56 }
 0x2cd   : > { %v1036_v59 = vadd.f32 %v1019_v54, %v1018_v49  ;;  %v996_v60 = vadd.f32 %v995_v53, %v974_v51  ;;  %v1033_v61 = vadd.f32 %v1032_v55, %v1017_v52  ;;  %v891_v62 = vpop.f32.mrb[10].mxu0 }
 0x2ce   : > { %v1022_v63 = vmul.f32 %v891_v62, %v891_v62  ;;  %v893_v0 = vpop.f32.mrb[11].mxu0  ;;  %v980_v2 = vpop.f32.mrb[10].mxu1 }
 0x2cf   : > { %1034 = vadd.xlane.f32.xlu0 %v1033_v61  ;;  %v1000_v3 = vadd.f32 %v893_v0, %v891_v62  ;;  %v1023_v4 = vmul.f32 %v893_v0, %v893_v0  ;;  %v1024_v5 = vmul.f32 %v980_v2, %v980_v2  ;;  %v997_v6 = vadd.f32 %v996_v60, %v976_v56  ;;  %v982_v7 = vpop.f32.mrb[11].mxu1 }
 0x2d0   : > { %993 = vadd.xlane.f32.xlu1 %v992_v58  ;;  %v1037_v8 = vadd.f32 %v1036_v59, %v1020_v57  ;;  %v1025_v11 = vmul.f32 %v982_v7, %v982_v7 }
 0x2d1   : > { %v1041_v9 = vadd.f32 %v1023_v4, %v1022_v63  ;;  %v1001_v10 = vadd.f32 %v1000_v3, %v980_v2 }
 0x2d2   : > { %v1038_v12 = vadd.f32 %v1037_v8, %v1021_v1 }
 0x2d3   : > { %998 = vadd.xlane.f32.xlu0 %v997_v6  ;;  %v1002_v13 = vadd.f32 %v1001_v10, %v982_v7  ;;  %v1042_v14 = vadd.f32 %v1041_v9, %v1024_v5 }
 0x2d4   : > { %1039 = vadd.xlane.f32.xlu1 %v1038_v12 }
 0x2d5   : > { %v1043_v15 = vadd.f32 %v1042_v14, %v1025_v11 }
 0x2d7   : > { %1003 = vadd.xlane.f32.xlu0 %v1002_v13 }
 0x2db   : > { %1044 = vadd.xlane.f32.xlu0 %v1043_v15 }
 0x356   : > { %v989_v16 = vpop.xlane.xlu0 %988 }
 0x357   : > { %1006 = vst.msk [vmem:[%s423_s23] sm:$0xff] %vm1005_vm2, %v989_v16 }
 0x359   : > { %v1030_v18 = vpop.xlane.xlu1 %1029 }
 0x35a   : > { %1046 = vst.msk [vmem:[%s432_s30] sm:$0xff] %vm1005_vm2, %v1030_v18 }
 0x35c   : > { %v1035_v19 = vpop.xlane.xlu0 %1034 }
 0x35d   : > { %1047 = vst.msk [vmem:[%s432_s30 + $0x8] sm:$0xff] %vm1005_vm2, %v1035_v19  ;;  %v994_v20 = vpop.xlane.xlu1 %993 }
 0x35e   : > { %1007 = vst.msk [vmem:[%s423_s23 + $0x8] sm:$0xff] %vm1005_vm2, %v994_v20 }
 0x360   : > { %v999_v21 = vpop.xlane.xlu0 %998 }
 0x361   : > { %1008 = vst.msk [vmem:[%s423_s23 + $0x10] sm:$0xff] %vm1005_vm2, %v999_v21  ;;  %v1040_v22 = vpop.xlane.xlu1 %1039 }
 0x362   : > { %1048 = vst.msk [vmem:[%s432_s30 + $0x10] sm:$0xff] %vm1005_vm2, %v1040_v22 }
 0x364   : > { %v1004_v23 = vpop.xlane.xlu0 %1003 }
 0x365   : > { %1009 = vst.msk [vmem:[%s423_s23 + $0x18] sm:$0xff] %vm1005_vm2, %v1004_v23 }
 0x368   : > { %v1045_v24 = vpop.xlane.xlu0 %1044 }
 0x369   : > { %1049 = vst.msk [vmem:[%s432_s30 + $0x18] sm:$0xff] %vm1005_vm2, %v1045_v24 }
 0x36a PF: > { %s20_s15 = sadd.s32 1, %s1358_s15   ;;  %s1596_s26 = sld [smem:[#allocation3_spill]] }
 0x36b   : > { %p17_p12 = scmp.ge.s32.totalorder %s20_s15, 6   ;;  %s1597_s30 = smov %s1338_s10 }
 0x36c   : > { %s1598_s10 = smov %s1463_s22  ;;  %s1599_s11 = smov %s1350_s13 }
 0x36d   : > { %s1600_s12 = smov %s1354_s14  ;;  %s1601_s13 = smov %s1604_s16 }
 0x36e   :  { %19 = sbr.rel (!%p17_p12) target bundleno = 4 (0x4), region = 122 }
 0x370   : > { %s1602_s14 = smov %s1596_s26 }

// kernel: res_bottleneck.7
= control target key start
LH: loop header
LB: loop body
LE: loop exit
PB: predicated region body
PF: predicated region fallthrough
CT: control target
= control target key end

     0   :  { %s1753_s0 = inlined_call_operand.vmem [shape: f32[2,32,1024], index: 0, kind: input, shape index: {}]   ;;  %s1754_s1 = inlined_call_operand.vmem [shape: f32[8,32], index: 1, kind: input, shape index: {}]   ;;  %s1755_s2 = inlined_call_operand.vmem [shape: f32[8,8], index: 2, kind: input, shape index: {}]   ;;  %s1756_s3 = inlined_call_operand.vmem [shape: f32[32,8], index: 3, kind: input, shape index: {}]   ;;  %s1757_s4 = inlined_call_operand.vmem [shape: f32[8,1], index: 4, kind: input, shape index: {}]   ;;  %s1758_s5 = inlined_call_operand.vmem [shape: f32[8,1], index: 5, kind: input, shape index: {}]   ;;  %s1759_s6 = inlined_call_operand.vmem [shape: f32[8,1], index: 6, kind: input, shape index: {}]   ;;  %s1760_s7 = inlined_call_operand.vmem [shape: f32[8,1], index: 7, kind: input, shape index: {}]   ;;  %s1761_s8 = inlined_call_operand.vmem [shape: f32[32,1], index: 8, kind: input, shape index: {}]   ;;  %s1762_s9 = inlined_call_operand.vmem [shape: f32[32,1], index: 9, kind: input, shape index: {}]   ;;  %s1763_s10 = inlined_call_operand.vmem [shape: f32[2,32,1024], index: 10, kind: output, shape index: {}]  }
   0x1   :  { %1766 = sst [smem:[#allocation6_spill]] %s1763_s10 }
   0x2   :  { %s1455_s13 = smov 0   ;;  %s1457_s14 = smov 0  }
   0x3   :  { %s1459_s15 = smov 0   ;;  %s1461_s16 = smov 0  }
   0x4   :  { %s1463_s17 = smov 0   ;;  %s1465_s18 = smov 0  }
   0x5   :  { %s1467_s19 = smov 0  }
   0x6 LB: > { %s29_s20 = sadd.s32 1, %s1388_s17  ;;  %s32_s21 = sadd.s32 1, %s1392_s18  ;;  %s1396_s19 = sphi %s1467_s19, %s20_s19   ;;  %s1392_s18 = sphi %s1465_s18, %s1778_s18   ;;  %s1388_s17 = sphi %s1463_s17, %s1777_s17   ;;  %s1384_s16 = sphi %s1461_s16, %s1776_s16   ;;  %s1380_s15 = sphi %s1459_s15, %s1775_s15   ;;  %s1376_s14 = sphi %s1457_s14, %s1774_s14   ;;  %s1372_s13 = sphi %s1455_s13, %s1773_s13  }
   0x7   : > { %p30_p0 = scmp.ge.s32.totalorder %s29_s20, 2  ;;  %s1237_s22 = sadd.s32 4294967295, %s1396_s19  }
   0x8   : > { %p48_p1 = scmp.ne.s32.totalorder %s1376_s14, %s1372_s13  ;;  %p49_p2 = scmp.eq.s32.totalorder %s1396_s19, 0 }
   0x9   : > { %s1780_s20 = smov (%p30_p0, %s29_s20), 0  ;;  %s1782_s21 = smov (!%p30_p0, %s32_s21), %s1392_s18 }
   0xa   : > { %1767 = sst [smem:[#allocation4_spill]] %s1780_s20  ;;  %p34_p3 = scmp.ge.s32.totalorder %s1782_s21, 2 }
   0xb   : > { %p269_p4 = scmp.eq.s32.totalorder %s1237_s22, 3  ;;  %s37_s23 = ssub.s32 %s1388_s17, %s1780_s20 }
   0xc   : > { %p50_p5 = por %p49_p2, %p48_p1  ;;  %s1784_s21 = smov (%p34_p3, %s1782_s21), 0 }
   0xd   : > { %1768 = sst [smem:[#allocation5_spill]] %s1784_s21  ;;  %p1503_p6 = por %p269_p4, %p48_p1 }
   0xe   : > { %s36_s25 = ssub.s32 %s1392_s18, %s1784_s21  ;;  %s41_s27 = sadd.s32 1, %s1376_s14 }
   0xf   : > { %s38_s26 = sor.u32 %s37_s23, %s36_s25  ;;  %p1240_p8 = scmp.ge.s32.totalorder %s1396_s19, 4 }
  0x10   : > { %p39_p7 = scmp.eq.s32.totalorder %s38_s26, 0 }
  0x11   : > { %318 = sbr.rel (%p1240_p8) target bundleno = 39 (0x27), region = 52 }
  0x12   : > { %s1511_s28 = scalar_select %p39_p7, %s1376_s14, %s41_s27  }
  0x18   : > { %321 = sbr.rel (!%p50_p5) target bundleno = 39 (0x27), region = 56  ;;  %s323_s29 = sand.u32 (%p50_p5), 1, %s1376_s14  }
  0x19   : > { %s1242_s30 = sshll.u32 (%p50_p5), %s1388_s17, 2  ;;  %s1241_s11 = sshll.u32 (%p50_p5), %s323_s29, 7 }
  0x1a   : > { %s1243_s12 = sshll.u32 (%p50_p5), %s1392_s18, 5  ;;  %s325_s25 = scalar_lea.vmem (%p50_p5), [#allocation2], %s1241_s11 }
  0x1b   : > { %s328_s22 = sadd.s32 (%p50_p5), %s1243_s12, %s1242_s30 }
  0x1c   : > { %s1244_s20 = sshll.u32 (%p50_p5), %s328_s22, 3 }
  0x1d   : > { %s1520_s23 = scalar_lea.vmem (%p50_p5), %s1753_s0, %s1244_s20 }
  0x1e   : > { %v343_v0 = vld [vmem:[%s1520_s23] sm:$0xff] (%p50_p5)  ;;  %v345_v1 = vld [vmem:[%s1520_s23 + $0x8] sm:$0xff] (%p50_p5)  ;;  %v347_v2 = vld [vmem:[%s1520_s23 + $0x10] sm:$0xff] (%p50_p5) }
  0x1f   : > { %344 = vst [vmem:[%s325_s25] sm:$0xff] %v343_v0  ;;  %346 = vst [vmem:[%s325_s25 + $0x8] sm:$0xff] %v345_v1  ;;  %v349_v3 = vld [vmem:[%s1520_s23 + $0x18] sm:$0xff]  ;;  %v351_v4 = vld [vmem:[%s1520_s23 + $0x40] sm:$0xff] }
  0x20   : > { %348 = vst [vmem:[%s325_s25 + $0x10] sm:$0xff] %v347_v2  ;;  %v353_v5 = vld [vmem:[%s1520_s23 + $0x48] sm:$0xff]  ;;  %350 = vst [vmem:[%s325_s25 + $0x18] sm:$0xff] %v349_v3  ;;  %v355_v6 = vld [vmem:[%s1520_s23 + $0x50] sm:$0xff] }
  0x21   : > { %352 = vst [vmem:[%s325_s25 + $0x20] sm:$0xff] %v351_v4  ;;  %354 = vst [vmem:[%s325_s25 + $0x28] sm:$0xff] %v353_v5  ;;  %v357_v7 = vld [vmem:[%s1520_s23 + $0x58] sm:$0xff]  ;;  %v359_v8 = vld [vmem:[%s1520_s23 + $0x80] sm:$0xff] }
  0x22   : > { %356 = vst [vmem:[%s325_s25 + $0x30] sm:$0xff] %v355_v6  ;;  %358 = vst [vmem:[%s325_s25 + $0x38] sm:$0xff] %v357_v7  ;;  %v361_v9 = vld [vmem:[%s1520_s23 + $0x88] sm:$0xff]  ;;  %v363_v10 = vld [vmem:[%s1520_s23 + $0x90] sm:$0xff] }
  0x23   : > { %360 = vst [vmem:[%s325_s25 + $0x40] sm:$0xff] %v359_v8  ;;  %v365_v11 = vld [vmem:[%s1520_s23 + $0x98] sm:$0xff]  ;;  %362 = vst [vmem:[%s325_s25 + $0x48] sm:$0xff] %v361_v9  ;;  %v367_v12 = vld [vmem:[%s1520_s23 + $0xc0] sm:$0xff] }
  0x24   : > { %364 = vst [vmem:[%s325_s25 + $0x50] sm:$0xff] %v363_v10  ;;  %366 = vst [vmem:[%s325_s25 + $0x58] sm:$0xff] %v365_v11  ;;  %v369_v13 = vld [vmem:[%s1520_s23 + $0xc8] sm:$0xff]  ;;  %v371_v14 = vld [vmem:[%s1520_s23 + $0xd0] sm:$0xff] }
  0x25   : > { %368 = vst [vmem:[%s325_s25 + $0x60] sm:$0xff] %v367_v12  ;;  %370 = vst [vmem:[%s325_s25 + $0x68] sm:$0xff] %v369_v13  ;;  %v373_v15 = vld [vmem:[%s1520_s23 + $0xd8] sm:$0xff] }
  0x26   : > { %372 = vst [vmem:[%s325_s25 + $0x70] sm:$0xff] %v371_v14  ;;  %374 = vst [vmem:[%s325_s25 + $0x78] sm:$0xff] %v373_v15 }
  0x27 PF: > { %p1245_p9 = scmp.ge.s32.totalorder %s1396_s19, 1  ;;  %p379_p10 = scmp.lt.s32.totalorder %s1396_s19, 5 }
  0x29   : > { %p380_p11 = pnand %p1245_p9, %p379_p10 }
  0x2a   : > { %s386_s10 = sand.u32 (!%p380_p11), 1, %s1372_s13   ;;  %v587_v16 = vld [vmem:[%s1757_s4] sm:$0xff] (!%p380_p11)  ;;  %v1398_v17 = vmov (!%p380_p11), 0.0   ;;  %v1399_v18 = vmov (!%p380_p11), 0   ;;  %vm441_vm0 = vcmask (!%p380_p11), 261120   ;;  %v978_v46 = vld [vmem:[%s1761_s8 + $0x10] sm:$0xff] (!%p380_p11) }
  0x2b   : > { %383 = sbr.rel (%p380_p11) target bundleno = 743 (0x2e7), region = 79  ;;  %s1544_s26 = sshll.u32 (!%p380_p11), %s386_s10, 7  ;;  %509 = vmatprep.mubr.f32.mxu0 (!%p380_p11), %v1398_v17  ;;  %580 = vmatprep.mubr.f32.mxu1 (!%p380_p11), %v1398_v17  ;;  %v597_v22 = vld [vmem:[%s1758_s5] sm:$0xff] (!%p380_p11)  ;;  %v1018_v48 = vld [vmem:[%s1762_s9 + $0x10] sm:$0xff] (!%p380_p11)  ;;  %v977_v51 = vld [vmem:[%s1761_s8 + $0x8] sm:$0xff] (!%p380_p11)  ;;  %vm612_vm1 = vcmask (!%p380_p11), 64512  }
  0x2c   : > { %1340 = vset.pattern.permute.xlu0 (!%p380_p11), %v1399_v18  ;;  %1341 = vset.pattern.permute.xlu1 (!%p380_p11), %v1399_v18  ;;  %s388_s27 = scalar_lea.vmem (!%p380_p11), [#allocation2], %s1544_s26  ;;  %v976_v44 = vld [vmem:[%s1761_s8] sm:$0xff] (!%p380_p11)  ;;  %v979_v52 = vld [vmem:[%s1761_s8 + $0x18] sm:$0xff] (!%p380_p11)  ;;  %v1017_v53 = vld [vmem:[%s1762_s9 + $0x8] sm:$0xff] (!%p380_p11)  ;;  %s1675_s21 = scalar_lea.vmem (!%p380_p11), [#allocation3], %s1544_s26 }
  0x2d   : > { %v1549_v19 = vld [vmem:[%s388_s27 + $0x8] sm:$0xff] (!%p380_p11)  ;;  %v1553_v21 = vld [vmem:[%s388_s27 + $0x18] sm:$0xff] (!%p380_p11)  ;;  %590 = vperm.xlu0 (!%p380_p11), %1340, %v587_v16   ;;  %v1562_v25 = vld [vmem:[%s388_s27] sm:$0xff] (!%p380_p11) }
  0x2e   : > { %v1551_v20 = vld [vmem:[%s388_s27 + $0x28] sm:$0xff] (!%p380_p11)  ;;  %v1560_v24 = vld [vmem:[%s388_s27 + $0x38] sm:$0xff] (!%p380_p11)  ;;  %v1564_v26 = vld [vmem:[%s388_s27 + $0x20] sm:$0xff] (!%p380_p11) }
  0x2f   : > { %v1266_v23 = vpack.c.bf16 (!%p380_p11), %v1551_v20, %v1549_v19  ;;  %v1274_v27 = vpack.c.bf16 (!%p380_p11), %v1560_v24, %v1553_v21  ;;  %v1268_v28 = vpack.c.bf16 (!%p380_p11), %v1564_v26, %v1562_v25  ;;  %v1570_v29 = vld [vmem:[%s388_s27 + $0x10] sm:$0xff] (!%p380_p11)  ;;  %v1574_v31 = vld [vmem:[%s388_s27 + $0x48] sm:$0xff] (!%p380_p11)  ;;  %v1580_v34 = vld [vmem:[%s388_s27 + $0x58] sm:$0xff] (!%p380_p11) }
  0x30   : > { %v1572_v30 = vld [vmem:[%s388_s27 + $0x30] sm:$0xff] (!%p380_p11)  ;;  %v1578_v33 = vld [vmem:[%s388_s27 + $0x68] sm:$0xff] (!%p380_p11)  ;;  %v1582_v35 = vld [vmem:[%s388_s27 + $0x78] sm:$0xff] (!%p380_p11) }
  0x31   : > { %1267 = vmatprep.subr.bf16.mxu0 (!%p380_p11), %v1266_v23  ;;  %v1276_v32 = vpack.c.bf16 (!%p380_p11), %v1572_v30, %v1570_v29  ;;  %1275 = vmatprep.subr.bf16.mxu1 (!%p380_p11), %v1274_v27  ;;  %v1270_v36 = vpack.c.bf16 (!%p380_p11), %v1578_v33, %v1574_v31  ;;  %v1278_v37 = vpack.c.bf16 (!%p380_p11), %v1582_v35, %v1580_v34  ;;  %v1588_v38 = vld [vmem:[%s388_s27 + $0x40] sm:$0xff] (!%p380_p11)  ;;  %v1592_v40 = vld [vmem:[%s388_s27 + $0x50] sm:$0xff] (!%p380_p11)  ;;  %v1019_v54 = vld [vmem:[%s1762_s9 + $0x18] sm:$0xff] (!%p380_p11) }
  0x32   : > { %1269 = vmatpush1.bf16.msra.mxu0 %v1268_v28  ;;  %v1590_v39 = vld [vmem:[%s388_s27 + $0x60] sm:$0xff]  ;;  %v1596_v42 = vld [vmem:[%s388_s27 + $0x70] sm:$0xff]  ;;  %600 = vperm.xlu0 %1340, %v597_v22   ;;  %s1261_s26 = sshll.u32 (%p1503_p6), %s1380_s15, 2  ;;  %s1262_s27 = sshll.u32 (%p1503_p6), %s1384_s16, 5 }
  0x33   : > { %1277 = vmatpush1.bf16.msra.mxu1 %v1276_v32  ;;  %v1272_v41 = vpack.c.bf16 %v1590_v39, %v1588_v38  ;;  %1271 = vmatprep.subr.bf16.mxu0 %v1270_v36  ;;  %v1280_v43 = vpack.c.bf16 %v1596_v42, %v1592_v40  ;;  %v440_v45 = vld [vmem:[%s1754_s1] sm:$0xff]  ;;  %s1113_s24 = sadd.s32 (%p1503_p6), %s1262_s27, %s1261_s26  ;;  %s1770_s11 = sld [smem:[#allocation6_spill]] (%p1503_p6) }
  0x34   : > { %1279 = vmatprep.subr.bf16.mxu1 %v1278_v37  ;;  %v1016_v47 = vld [vmem:[%s1762_s9] sm:$0xff]  ;;  %s1263_s13 = sshll.u32 (%p1503_p6), %s1113_s24, 3 }
  0x35   : > { %v758_v49 = vld [vmem:[%s1759_s6] sm:$0xff] }
  0x36   : > { %1273 = vmatpush1.bf16.msra.mxu0 %v1272_v41  ;;  %982 = vperm.xlu0 %1340, %v976_v44   ;;  %v768_v50 = vld [vmem:[%s1760_s7] sm:$0xff] }
  0x37   : > { %1281 = vmatpush1.bf16.msra.mxu1 %v1280_v43  ;;  %761 = vperm.xlu1 %1341, %v758_v49   ;;  %v611_v8 = vld [vmem:[%s1755_s2] sm:$0xff] }
  0x38   : > { %v782_v44 = vld [vmem:[%s1756_s3] sm:$0xff] }
  0x39   : > { %1248 = vmatmul.mubr.msk.f32.vlgmr.msra.gmra.mrb[0].mxu0 %vm441_vm0, %v440_v45  ;;  %s1115_s12 = scalar_lea.vmem (%p1503_p6), %s1770_s11, %s1263_s13 }
  0x3a   : > { %1249 = vmatmul.mubr.msk.f32.vlgmr.msra.gmra.mrb[0].mxu1 %vm441_vm0, %v440_v45  ;;  %680 = vmatprep.mubr.f32.mxu0 %v1398_v17 }
  0x3b   : > { %992 = vperm.xlu0 %1340, %v978_v46   ;;  %751 = vmatprep.mubr.f32.mxu1 %v1398_v17  ;;  %v783_v46 = vld [vmem:[%s1756_s3 + $0x8] sm:$0xff] }
  0x3c   : > { %771 = vperm.xlu1 %1341, %v768_v50  }
  0x3f   : > { %1022 = vperm.xlu0 %1340, %v1016_v47   ;;  %v784_v47 = vld [vmem:[%s1756_s3 + $0x10] sm:$0xff] }
  0x40   : > { %987 = vperm.xlu1 %1341, %v977_v51  }
  0x43   : > { %1032 = vperm.xlu0 %1340, %v1018_v48   ;;  %v785_v48 = vld [vmem:[%s1756_s3 + $0x18] sm:$0xff] }
  0x44   : > { %997 = vperm.xlu1 %1341, %v979_v52  }
  0x48   : > { %1027 = vperm.xlu1 %1341, %v1017_v53  }
  0x4c   : > { %1037 = vperm.xlu1 %1341, %v1019_v54  }
  0xac   : > { %v591_v55 = vpop.permute.xlu0 %590 }
  0xb1   : > { %v601_v60 = vpop.permute.xlu0 %600 }
  0xb5   : > { %v983_v49 = vpop.permute.xlu0 %982 }
  0xb6   : > { %v762_v10 = vpop.permute.xlu1 %761 }
  0xba   : > { %v993_v51 = vpop.permute.xlu0 %992 }
  0xbb   : > { %v772_v15 = vpop.permute.xlu1 %771 }
  0xbf   : > { %v988_v50 = vpop.permute.xlu1 %987 }
  0xc3   : > { %v1668_v52 = vpop.permute.xlu1 %997 }
 0x10c   : > { %v511_v56 = vpop.f32.mrb[0].mxu0 }
 0x10d   : > { %v593_v57 = vmul.f32 %v591_v55, %v511_v56  ;;  %v582_v58 = vpop.f32.mrb[0].mxu1  ;;  %v513_v59 = vpop.f32.mrb[1].mxu0 }
 0x10e   : > { %v595_v61 = vmul.f32 %v591_v55, %v582_v58  ;;  %v594_v62 = vmul.f32 %v591_v55, %v513_v59  ;;  %v584_v63 = vpop.f32.mrb[1].mxu1 }
 0x10f   : > { %v603_v0 = vadd.f32 %v601_v60, %v593_v57  ;;  %v596_v1 = vmul.f32 %v591_v55, %v584_v63  ;;  %v1023_v57 = vpop.permute.xlu0 %1022 }
 0x110   : > { %v605_v2 = vadd.f32 %v601_v60, %v595_v61  ;;  %v604_v3 = vadd.f32 %v601_v60, %v594_v62 }
 0x111   : > { %v606_v4 = vadd.f32 %v601_v60, %v596_v1  ;;  %v607_v6 = vmax.f32 %v603_v0, 0.0 }
 0x112   : > { %v608_v5 = vmax.f32 %v604_v3, 0.0  ;;  %v609_v9 = vmax.f32 %v605_v2, 0.0 }
 0x113   : > { %v610_v7 = vmax.f32 %v606_v4, 0.0 }
 0x114   : > { %616 = vmatprep.subr.mxu0 %v608_v5 }
 0x115   : > { %687 = vmatprep.subr.mxu1 %v610_v7  ;;  %617 = vmatpush1.msra.mxu0 %v607_v6  ;;  %v1028_v6 = vpop.permute.xlu1 %1027 }
 0x116   : > { %688 = vmatpush1.msra.mxu1 %v609_v9  ;;  %1250 = vmatmul.mubr.msk.f32.vlgmr.msra.gmra.mrb[2].mxu0 %vm612_vm1, %v611_v8 }
 0x117   : > { %1251 = vmatmul.mubr.msk.f32.vlgmr.msra.gmra.mrb[2].mxu1 %vm612_vm1, %v611_v8  ;;  %862 = vmatprep.mubr.f32.mxu0 %v1398_v17 }
 0x118   : > { %951 = vmatprep.mubr.f32.mxu1 %v1398_v17 }
 0x1e9   : > { %v682_v11 = vpop.f32.mrb[2].mxu0 }
 0x1ea   : > { %v764_v12 = vmul.f32 %v762_v10, %v682_v11  ;;  %v753_v13 = vpop.f32.mrb[2].mxu1  ;;  %v684_v14 = vpop.f32.mrb[3].mxu0 }
 0x1eb   : > { %v766_v16 = vmul.f32 %v762_v10, %v753_v13  ;;  %v765_v18 = vmul.f32 %v762_v10, %v684_v14  ;;  %v755_v22 = vpop.f32.mrb[3].mxu1 }
 0x1ec   : > { %v774_v23 = vadd.f32 %v772_v15, %v764_v12  ;;  %v767_v27 = vmul.f32 %v762_v10, %v755_v22 }
 0x1ed   : > { %v776_v28 = vadd.f32 %v772_v15, %v766_v16  ;;  %v775_v32 = vadd.f32 %v772_v15, %v765_v18 }
 0x1ee   : > { %v777_v36 = vadd.f32 %v772_v15, %v767_v27  ;;  %v778_v41 = vmax.f32 %v774_v23, 0.0 }
 0x1ef   : > { %v779_v37 = vmax.f32 %v775_v32, 0.0  ;;  %v780_v45 = vmax.f32 %v776_v28, 0.0 }
 0x1f0   : > { %v781_v43 = vmax.f32 %v777_v36, 0.0  ;;  %v1033_v36 = vpop.permute.xlu0 %1032 }
 0x1f1   : > { %798 = vmatprep.subr.mxu0 %v779_v37 }
 0x1f2   : > { %887 = vmatprep.subr.mxu1 %v781_v43  ;;  %799 = vmatpush1.msra.mxu0 %v778_v41 }
 0x1f3   : > { %888 = vmatpush1.msra.mxu1 %v780_v45  ;;  %1252 = vmatmul.mubr.msk.f32.vlgmr.msra.gmra.mrb[4].mxu0 %vm612_vm1, %v782_v44 }
 0x1f4   : > { %1256 = vmatmul.mubr.msk.f32.vlgmr.msra.gmra.mrb[4].mxu1 %vm612_vm1, %v782_v44  ;;  %868 = vmatprep.mubr.f32.mxu0 %v1398_v17 }
 0x1f5   : > { %957 = vmatprep.mubr.f32.mxu1 %v1398_v17 }
 0x1f7   : > { %1253 = vmatmul.mubr.msk.f32.gmra.mrb[6].mxu0 %vm612_vm1, %v783_v46 }
 0x1f8   : > { %1257 = vmatmul.mubr.msk.f32.gmra.mrb[6].mxu1 %vm612_vm1, %v783_v46  ;;  %874 = vmatprep.mubr.f32.mxu0 %v1398_v17 }
 0x1f9   : > { %963 = vmatprep.mubr.f32.mxu1 %v1398_v17 }
 0x1fb   : > { %1254 = vmatmul.mubr.msk.f32.gmra.mrb[8].mxu0 %vm612_vm1, %v784_v47 }
 0x1fc   : > { %1258 = vmatmul.mubr.msk.f32.gmra.mrb[8].mxu1 %vm612_vm1, %v784_v47  ;;  %880 = vmatprep.mubr.f32.mxu0 %v1398_v17 }
 0x1fd   : > { %969 = vmatprep.mubr.f32.mxu1 %v1398_v17 }
 0x1ff   : > { %1255 = vmatmul.mubr.msk.f32.gmra.mrb[10].mxu0 %vm612_vm1, %v785_v48 }
 0x200   : > { %1259 = vmatmul.mubr.msk.f32.gmra.mrb[10].mxu1 %vm612_vm1, %v785_v48 }
 0x2c6   : > { %v864_v53 = vpop.f32.mrb[4].mxu0 }
 0x2c7   : > { %v1000_v54 = vmul.f32 %v983_v49, %v864_v53  ;;  %v953_v55 = vpop.f32.mrb[4].mxu1  ;;  %v866_v56 = vpop.f32.mrb[5].mxu0 }
 0x2c8   : > { %v1002_v58 = vmul.f32 %v983_v49, %v953_v55  ;;  %v1001_v59 = vmul.f32 %v983_v49, %v866_v56  ;;  %v955_v60 = vpop.f32.mrb[5].mxu1 }
 0x2c9   : > { %v1040_v61 = vadd.f32 %v1023_v57, %v1000_v54  ;;  %v1003_v62 = vmul.f32 %v983_v49, %v955_v60 }
 0x2ca   : > { %v1042_v17 = vadd.f32 %v1023_v57, %v1002_v58  ;;  %v1041_v63 = vadd.f32 %v1023_v57, %v1001_v59  ;;  %v870_v0 = vpop.f32.mrb[6].mxu0 }
 0x2cb   : > { %v1056_v1 = vadd.f32 %v1040_v61, %v1562_v25  ;;  %v1043_v2 = vadd.f32 %v1023_v57, %v1003_v62  ;;  %v1004_v3 = vmul.f32 %v988_v50, %v870_v0  ;;  %v959_v4 = vpop.f32.mrb[6].mxu1  ;;  %v872_v5 = vpop.f32.mrb[7].mxu0 }
 0x2cc   : > { %v1058_v7 = vadd.f32 %v1042_v17, %v1570_v29  ;;  %v1057_v8 = vadd.f32 %v1041_v63, %v1549_v19  ;;  %v1006_v9 = vmul.f32 %v988_v50, %v959_v4  ;;  %v1005_v10 = vmul.f32 %v988_v50, %v872_v5  ;;  %v961_v11 = vpop.f32.mrb[7].mxu1 }
 0x2cd   : > { %v1072_v12 = vmax.f32 %v1056_v1, 0.0  ;;  %v1059_v13 = vadd.f32 %v1043_v2, %v1553_v21  ;;  %v1044_v14 = vadd.f32 %v1028_v6, %v1004_v3  ;;  %v1007_v15 = vmul.f32 %v988_v50, %v961_v11 }
 0x2ce   : > { %v1074_v16 = vmax.f32 %v1058_v7, 0.0  ;;  %v1073_v25 = vmax.f32 %v1057_v8, 0.0  ;;  %v1046_v18 = vadd.f32 %v1028_v6, %v1006_v9  ;;  %v1045_v22 = vadd.f32 %v1028_v6, %v1005_v10  ;;  %v876_v23 = vpop.f32.mrb[8].mxu0 }
 0x2cf   : > { %1088 = vst [vmem:[%s1675_s21] sm:$0xff] %v1072_v12  ;;  %v1075_v19 = vmax.f32 %v1059_v13, 0.0  ;;  %v1060_v29 = vadd.f32 %v1044_v14, %v1564_v26  ;;  %v1047_v27 = vadd.f32 %v1028_v6, %v1007_v15  ;;  %v1008_v28 = vmul.f32 %v993_v51, %v876_v23  ;;  %v965_v21 = vpop.f32.mrb[8].mxu1  ;;  %v878_v32 = vpop.f32.mrb[9].mxu0 }
 0x2d0   : > { %1090 = vst [vmem:[%s1675_s21 + $0x10] sm:$0xff] %v1074_v16  ;;  %1089 = vst [vmem:[%s1675_s21 + $0x8] sm:$0xff] %v1073_v25  ;;  %v1062_v37 = vadd.f32 %v1046_v18, %v1572_v30  ;;  %v1061_v41 = vadd.f32 %v1045_v22, %v1551_v20  ;;  %v1010_v43 = vmul.f32 %v993_v51, %v965_v21  ;;  %v967_v45 = vpop.f32.mrb[9].mxu1 }
 0x2d1   : > { %v1009_v44 = vmul.f32 %v993_v51, %v878_v32  ;;  %1091 = vst [vmem:[%s1675_s21 + $0x18] sm:$0xff] %v1075_v19  ;;  %v1076_v46 = vmax.f32 %v1060_v29, 0.0  ;;  %v1063_v47 = vadd.f32 %v1047_v27, %v1560_v24  ;;  %v1048_v26 = vadd.f32 %v1033_v36, %v1008_v28  ;;  %v1038_v24 = vpop.permute.xlu1 %1037 }
 0x2d2   : > { %v1011_v48 = vmul.f32 %v993_v51, %v967_v45  ;;  %v1078_v49 = vmax.f32 %v1062_v37, 0.0  ;;  %v1077_v50 = vmax.f32 %v1061_v41, 0.0  ;;  %v1050_v53 = vadd.f32 %v1033_v36, %v1010_v43  ;;  %v882_v55 = vpop.f32.mrb[10].mxu0 }
 0x2d3   : > { %v1049_v54 = vadd.f32 %v1033_v36, %v1009_v44  ;;  %1092 = vst [vmem:[%s1675_s21 + $0x20] sm:$0xff] %v1076_v46  ;;  %v1079_v30 = vmax.f32 %v1063_v47, 0.0  ;;  %v1064_v20 = vadd.f32 %v1048_v26, %v1588_v38  ;;  %v1012_v57 = vmul.f32 %v1668_v52, %v882_v55  ;;  %v971_v58 = vpop.f32.mrb[10].mxu1  ;;  %v884_v59 = vpop.f32.mrb[11].mxu0 }
 0x2d4   : > { %v1051_v56 = vadd.f32 %v1033_v36, %v1011_v48  ;;  %1094 = vst [vmem:[%s1675_s21 + $0x30] sm:$0xff] %v1078_v49  ;;  %1093 = vst [vmem:[%s1675_s21 + $0x28] sm:$0xff] %v1077_v50  ;;  %v1066_v51 = vadd.f32 %v1050_v53, %v1592_v40  ;;  %v1014_v61 = vmul.f32 %v1668_v52, %v971_v58  ;;  %v973_v38 = vpop.f32.mrb[11].mxu1 }
 0x2d5   : > { %v1065_v60 = vadd.f32 %v1049_v54, %v1574_v31  ;;  %v1013_v62 = vmul.f32 %v1668_v52, %v884_v59  ;;  %1095 = vst [vmem:[%s1675_s21 + $0x38] sm:$0xff] %v1079_v30  ;;  %v1080_v17 = vmax.f32 %v1064_v20, 0.0  ;;  %v1052_v0 = vadd.f32 %v1038_v24, %v1012_v57 }
 0x2d6   : > { %v1067_v63 = vadd.f32 %v1051_v56, %v1580_v34  ;;  %v1015_v1 = vmul.f32 %v1668_v52, %v973_v38  ;;  %v1082_v2 = vmax.f32 %v1066_v51, 0.0  ;;  %v1054_v40 = vadd.f32 %v1038_v24, %v1014_v61 }
 0x2d7   : > { %v1081_v3 = vmax.f32 %v1065_v60, 0.0  ;;  %v1053_v31 = vadd.f32 %v1038_v24, %v1013_v62  ;;  %1096 = vst [vmem:[%s1675_s21 + $0x40] sm:$0xff] %v1080_v17  ;;  %v1068_v5 = vadd.f32 %v1052_v0, %v1590_v39  ;;  %v1132_v39 = vld [vmem:[%s1675_s21 + $0x10] sm:$0xff] (%p1503_p6) }
 0x2d8   : > { %v1083_v4 = vmax.f32 %v1067_v63, 0.0  ;;  %v1055_v6 = vadd.f32 %v1038_v24, %v1015_v1  ;;  %1098 = vst [vmem:[%s1675_s21 + $0x50] sm:$0xff] %v1082_v2  ;;  %v1070_v34 = vadd.f32 %v1054_v40, %v1596_v42  ;;  %1110 = sbr.rel (!%p1503_p6) target bundleno = 743 (0x2e7), region = 87  ;;  %v1134_v42 = vld [vmem:[%s1675_s21 + $0x18] sm:$0xff] (%p1503_p6)  ;;  %1133 = vst [vmem:[%s1115_s12 + $0x10] sm:$0xff] (%p1503_p6), %v1132_v39 }
 0x2d9   : > { %1097 = vst [vmem:[%s1675_s21 + $0x48] sm:$0xff] %v1081_v3  ;;  %v1069_v7 = vadd.f32 %v1053_v31, %v1578_v33  ;;  %v1084_v52 = vmax.f32 %v1068_v5, 0.0  ;;  %v1128_v33 = vld [vmem:[%s1675_s21] sm:$0xff] (%p1503_p6)  ;;  %1135 = vst [vmem:[%s1115_s12 + $0x18] sm:$0xff] (%p1503_p6), %v1134_v42 }
 0x2da   : > { %1099 = vst [vmem:[%s1675_s21 + $0x58] sm:$0xff] %v1083_v4  ;;  %v1071_v8 = vadd.f32 %v1055_v6, %v1582_v35  ;;  %v1086_v9 = vmax.f32 %v1070_v34, 0.0  ;;  %v1130_v35 = vld [vmem:[%s1675_s21 + $0x8] sm:$0xff] (%p1503_p6)  ;;  %v1136_v12 = vld [vmem:[%s1675_s21 + $0x20] sm:$0xff] (%p1503_p6)  ;;  %1129 = vst [vmem:[%s1115_s12] sm:$0xff] (%p1503_p6), %v1128_v33 }
 0x2db   : > { %v1085_v10 = vmax.f32 %v1069_v7, 0.0  ;;  %1100 = vst [vmem:[%s1675_s21 + $0x60] sm:$0xff] %v1084_v52  ;;  %v1138_v13 = vld [vmem:[%s1675_s21 + $0x28] sm:$0xff] (%p1503_p6)  ;;  %v1140_v14 = vld [vmem:[%s1675_s21 + $0x30] sm:$0xff] (%p1503_p6)  ;;  %1131 = vst [vmem:[%s1115_s12 + $0x8] sm:$0xff] (%p1503_p6), %v1130_v35 }
 0x2dc   : > { %v1087_v11 = vmax.f32 %v1071_v8, 0.0  ;;  %1102 = vst [vmem:[%s1675_s21 + $0x70] sm:$0xff] %v1086_v9  ;;  %v1142_v15 = vld [vmem:[%s1675_s21 + $0x38] sm:$0xff] (%p1503_p6)  ;;  %1137 = vst [vmem:[%s1115_s12 + $0x40] sm:$0xff] (%p1503_p6), %v1136_v12 }
 0x2dd   : > { %1101 = vst [vmem:[%s1675_s21 + $0x68] sm:$0xff] %v1085_v10  ;;  %1139 = vst [vmem:[%s1115_s12 + $0x48] sm:$0xff] (%p1503_p6), %v1138_v13 }
 0x2de   : > { %1103 = vst [vmem:[%s1675_s21 + $0x78] sm:$0xff] %v1087_v11  ;;  %v1144_v16 = vld [vmem:[%s1675_s21 + $0x40] sm:$0xff] (%p1503_p6)  ;;  %1141 = vst [vmem:[%s1115_s12 + $0x50] sm:$0xff] (%p1503_p6), %v1140_v14 }
 0x2df   : > { %v1148_v18 = vld [vmem:[%s1675_s21 + $0x50] sm:$0xff]  ;;  %1143 = vst [vmem:[%s1115_s12 + $0x58] sm:$0xff] %v1142_v15  ;;  %1145 = vst [vmem:[%s1115_s12 + $0x80] sm:$0xff] %v1144_v16 }
 0x2e0   : > { %v1146_v25 = vld [vmem:[%s1675_s21 + $0x48] sm:$0xff]  ;;  %1149 = vst [vmem:[%s1115_s12 + $0x90] sm:$0xff] %v1148_v18 }
 0x2e1   : > { %v1150_v22 = vld [vmem:[%s1675_s21 + $0x58] sm:$0xff]  ;;  %1147 = vst [vmem:[%s1115_s12 + $0x88] sm:$0xff] %v1146_v25 }
 0x2e2   : > { %1151 = vst [vmem:[%s1115_s12 + $0x98] sm:$0xff] %v1150_v22  ;;  %v1152_v23 = vld [vmem:[%s1675_s21 + $0x60] sm:$0xff] }
 0x2e3   : > { %v1156_v29 = vld [vmem:[%s1675_s21 + $0x70] sm:$0xff]  ;;  %1153 = vst [vmem:[%s1115_s12 + $0xc0] sm:$0xff] %v1152_v23 }
 0x2e4   : > { %v1154_v19 = vld [vmem:[%s1675_s21 + $0x68] sm:$0xff]  ;;  %1157 = vst [vmem:[%s1115_s12 + $0xd0] sm:$0xff] %v1156_v29 }
 0x2e5   : > { %1155 = vst [vmem:[%s1115_s12 + $0xc8] sm:$0xff] %v1154_v19  ;;  %v1158_v27 = vld [vmem:[%s1675_s21 + $0x78] sm:$0xff] }
 0x2e6   : > { %1159 = vst [vmem:[%s1115_s12 + $0xd8] sm:$0xff] %v1158_v27 }
 0x2e7 PF: > { %s20_s19 = sadd.s32 1, %s1396_s19   ;;  %s1771_s22 = sld [smem:[#allocation4_spill]] }
 0x2e8   : > { %p17_p12 = scmp.ge.s32.totalorder %s20_s19, 6   ;;  %s1772_s23 = sld [smem:[#allocation5_spill]] }
 0x2e9   : > { %s1773_s13 = smov %s1376_s14  ;;  %s1774_s14 = smov %s1511_s28 }
 0x2ea   : > { %s1775_s15 = smov %s1388_s17  ;;  %s1776_s16 = smov %s1392_s18 }
 0x2eb   :  { %19 = sbr.rel (!%p17_p12) target bundleno = 6 (0x6), region = 141 }
 0x2ed   : > { %s1777_s17 = smov %s1771_s22 }
 0x2ee   : > { %s1778_s18 = smov %s1772_s23 }

</bundles_post_ra>
